<compile_context>
chip_gen: v7x
topology: tpu7x:2x2x1
jax: 0.10.0
libtpu: 0.0.40
codegen_flags: <defaults>
</compile_context>

<pallas_src>
import functools

import jax
import jax.numpy as jnp
from jax.experimental import pallas as pl
from jax.experimental.pallas import tpu as pltpu


# ----------------------------------------------------------------------------
# Fused kernel: masked fusion + convblk(1x1+BN+ReLU) + channel attention +
#               channel pool + 7x7 spatial gate + final gating.
#               Channel-first flattened layout (C, HW) per batch item.
# ----------------------------------------------------------------------------
def _ffm_kernel(fsp_ref, fcp_ref, mask_ref,
                wds_ref, bds_ref, wblk1_ref, wblk2_ref, bblk_ref,
                watt_ref, batt_ref, row_ref, col_ref, wsg_ref, bsg_ref,
                fspd_out, fuse_out, feat_out, *, H, W):
    HW = H * W
    f32 = jnp.float32

    fsp = fsp_ref[0]                                 # (Csp, HW)
    fcp = fcp_ref[0]                                 # (Ccp, HW)

    # mask: resize -> sigmoid -> (>0.5).  sigmoid(x) > 0.5  <=>  x > 0.
    mk = (mask_ref[0] > 0.0).astype(f32)             # (1, HW)
    inv = 1.0 - mk

    # conv_downsample: 1x1 conv (no bias) + BN folded into (w, b)
    fspd = (jnp.dot(wds_ref[...], fsp, preferred_element_type=f32)
            + bds_ref[...])                          # (Ccp, HW)

    fuse = fcp * inv + fspd * mk                     # fcp_fuse, (Ccp, HW)

    # convblk on concat([fspd, fuse], channel) == W1 @ fspd + W2 @ fuse
    feat = (jnp.dot(wblk1_ref[...], fspd, preferred_element_type=f32)
            + jnp.dot(wblk2_ref[...], fuse, preferred_element_type=f32)
            + bblk_ref[...])
    feat = jnp.maximum(feat, 0.0)                    # ReLU

    # channel attention: global spatial mean -> 1x1 conv + BN -> sigmoid
    att = jnp.mean(feat, axis=1, keepdims=True)      # (Ccp, 1)
    att = jnp.dot(watt_ref[...], att, preferred_element_type=f32) + batt_ref[...]
    att = jax.nn.sigmoid(att)
    feat_channel = feat * (att + 1.0)                # feat*att + feat

    # ChannelPool: max / mean over channels (sublane reduce); stays in VMEM.
    cmax = jnp.max(feat_channel, axis=0, keepdims=True)     # (1, HW)
    cmean = jnp.mean(feat_channel, axis=0, keepdims=True)   # (1, HW)

    # SpatialGate: 7x7 conv(2->1, pad 3, no bias) + folded BN + sigmoid,
    # computed on the flattened (1, HW) maps: per-tap weighted combine, XLU
    # lane rotation, and zero-padding emulated by row/col border masks.
    row = row_ref[...]                               # (1, HW) int32
    col = col_ref[...]                               # (1, HW) int32
    # Precompute the 7 row predicates and 7 col predicates once (reused by
    # all 49 taps instead of 4 compares per tap).
    row_ok = [jnp.logical_and(row >= 3 - dh, row < H + 3 - dh)
              for dh in range(7)]
    col_ok = [jnp.logical_and(col >= 3 - dw, col < W + 3 - dw)
              for dw in range(7)]

    acc = jnp.zeros((1, HW), f32) + bsg_ref[0]       # folded BN bias
    for dh in range(7):
        for dw in range(7):
            t = dh * 7 + dw
            comb = cmax * wsg_ref[2 * t] + cmean * wsg_ref[2 * t + 1]
            shift = (-((dh - 3) * W + (dw - 3))) % HW
            if shift:
                comb = pltpu.roll(comb, shift, axis=1)
            ok = jnp.logical_and(row_ok[dh], col_ok[dw])
            acc = acc + jnp.where(ok, comb, 0.0)
    gate = jax.nn.sigmoid(acc)                       # (1, HW)

    # Lane-dense, already-NCHW outputs (last dim = HW).
    fspd_out[0] = fspd
    fuse_out[0] = fuse
    feat_out[0] = feat_channel * gate


# ----------------------------------------------------------------------------
# Glue: parameter folding, resize, free reshapes, pallas_call wiring.
# ----------------------------------------------------------------------------
def _fold_bn(w, gamma, beta, mean, var, eps=1e-5):
    scale = gamma / jnp.sqrt(var + eps)
    return w * scale[None, :], beta - mean * scale


def _bn_params(key, c):
    k1, k2, k3, k4 = jax.random.split(key, 4)
    gamma = 1.0 + 0.1 * jax.random.normal(k1, (c,), jnp.float32)
    beta = 0.1 * jax.random.normal(k2, (c,), jnp.float32)
    mean = 0.1 * jax.random.normal(k3, (c,), jnp.float32)
    var = jnp.abs(jax.random.normal(k4, (c,), jnp.float32)) + 0.5
    return gamma, beta, mean, var


def init_params(key, sp_channel, cp_channel):
    ks = jax.random.split(key, 8)
    csp, ccp = sp_channel, cp_channel

    # conv_downsample: Conv2d(csp -> ccp, 1x1, no bias) + BN(ccp)
    w = jax.random.normal(ks[0], (csp, ccp), jnp.float32) / jnp.sqrt(csp)
    w_ds, b_ds = _fold_bn(w, *_bn_params(ks[1], ccp))

    # convblk: Conv2d(2*ccp -> ccp, 1x1, no bias) + BN(ccp) (+ ReLU in kernel)
    w = jax.random.normal(ks[2], (2 * ccp, ccp), jnp.float32) / jnp.sqrt(2 * ccp)
    w_blk, b_blk = _fold_bn(w, *_bn_params(ks[3], ccp))

    # attention: Conv2d(ccp -> ccp, 1x1, no bias) + BN(ccp)
    w = jax.random.normal(ks[4], (ccp, ccp), jnp.float32) / jnp.sqrt(ccp)
    w_att, b_att = _fold_bn(w, *_bn_params(ks[5], ccp))

    # SpatialGate: Conv2d(2 -> 1, 7x7, pad 3, no bias) + BN(1)
    w_sg = jax.random.normal(ks[6], (7, 7, 2), jnp.float32) / jnp.sqrt(2 * 49)
    g, b, m, v = _bn_params(ks[7], 1)
    s = g / jnp.sqrt(v + 1e-5)
    wsg_flat = (w_sg * s[0]).reshape(-1)           # (98,), order (dh, dw, c)
    bsg = (b - m * s).reshape(1)                   # (1,)

    # Channel-first (transposed) weights so the kernel never transposes.
    return dict(
        w_ds_t=w_ds.T, b_ds=b_ds.reshape(ccp, 1),
        w_blk1_t=w_blk[:ccp].T, w_blk2_t=w_blk[ccp:].T,
        b_blk=b_blk.reshape(ccp, 1),
        w_att_t=w_att.T, b_att=b_att.reshape(ccp, 1),
        wsg=wsg_flat, bsg=bsg)


@jax.jit
def feature_fusion_forward(params, fsp, fcp, mask):
    """fsp: (N, Csp, H, W), fcp: (N, Ccp, h, w), mask: (N, 1, h', w') NCHW f32."""
    N, Csp, H, W = fsp.shape
    Ccp = params["w_ds_t"].shape[0]
    HW = H * W
    f32 = jnp.float32

    # bilinear resize (align_corners=False semantics) -- plain JAX glue
    mask_r = jax.image.resize(mask, (N, 1, H, W), method="bilinear")
    fcp_r = jax.image.resize(fcp, (N, Ccp, H, W), method="bilinear")

    # NCHW -> (N, C, HW): pure metadata reshape, no relayout.
    fsp_f = fsp.reshape(N, Csp, HW)
    fcp_f = fcp_r.reshape(N, Ccp, HW)
    mask_f = mask_r.reshape(N, 1, HW)

    # Pixel row/col index maps for the spatial-gate border masks.
    row_idx = jnp.repeat(jnp.arange(H, dtype=jnp.int32), W).reshape(1, HW)
    col_idx = jnp.tile(jnp.arange(W, dtype=jnp.int32), H).reshape(1, HW)

    per_b = lambda b: (b, 0, 0)
    full2 = lambda b: (0, 0)
    smem = pl.BlockSpec(memory_space=pltpu.MemorySpace.SMEM)

    kernel = functools.partial(_ffm_kernel, H=H, W=W)

    fspd, fuse, feat_out = pl.pallas_call(
        kernel,
        out_shape=[jax.ShapeDtypeStruct((N, Ccp, HW), f32),
                   jax.ShapeDtypeStruct((N, Ccp, HW), f32),
                   jax.ShapeDtypeStruct((N, Ccp, HW), f32)],
        grid=(N,),
        in_specs=[pl.BlockSpec((1, Csp, HW), per_b),      # fsp
                  pl.BlockSpec((1, Ccp, HW), per_b),      # fcp (resized)
                  pl.BlockSpec((1, 1, HW), per_b),        # mask (resized)
                  pl.BlockSpec((Ccp, Csp), full2),        # w_ds^T
                  pl.BlockSpec((Ccp, 1), full2),          # b_ds
                  pl.BlockSpec((Ccp, Ccp), full2),        # w_blk1^T
                  pl.BlockSpec((Ccp, Ccp), full2),        # w_blk2^T
                  pl.BlockSpec((Ccp, 1), full2),          # b_blk
                  pl.BlockSpec((Ccp, Ccp), full2),        # w_att^T
                  pl.BlockSpec((Ccp, 1), full2),          # b_att
                  pl.BlockSpec((1, HW), full2),           # row_idx
                  pl.BlockSpec((1, HW), full2),           # col_idx
                  smem,                                   # wsg (98,)
                  smem],                                  # bsg (1,)
        out_specs=[pl.BlockSpec((1, Ccp, HW), per_b),
                   pl.BlockSpec((1, Ccp, HW), per_b),
                   pl.BlockSpec((1, Ccp, HW), per_b)],
        compiler_params=pltpu.CompilerParams(
            dimension_semantics=("parallel",)),
    )(fsp_f, fcp_f, mask_f,
      params["w_ds_t"], params["b_ds"],
      params["w_blk1_t"], params["w_blk2_t"], params["b_blk"],
      params["w_att_t"], params["b_att"],
      row_idx, col_idx, params["wsg"], params["bsg"])

    # (N, C, HW) -> NCHW is a free reshape (no transpose needed).
    return (fspd.reshape(N, Ccp, H, W),
            fuse.reshape(N, Ccp, H, W),
            feat_out.reshape(N, Ccp, H, W))


if __name__ == "__main__":
    N, sp_channel, cp_channel = 2, 16, 8
    H = W = 16

    key = jax.random.PRNGKey(0)
    kp, k1, k2, k3 = jax.random.split(key, 4)

    params = init_params(kp, sp_channel, cp_channel)
    fsp = jax.random.normal(k1, (N, sp_channel, H, W), jnp.float32)
    fcp = jax.random.normal(k2, (N, cp_channel, H // 2, W // 2), jnp.float32)
    mask = jax.random.normal(k3, (N, 1, H // 2, W // 2), jnp.float32)

    fsp_out, fcp_fuse, feat_out = feature_fusion_forward(params, fsp, fcp, mask)
    jax.block_until_ready((fsp_out, fcp_fuse, feat_out))

    assert fsp_out.shape == (N, cp_channel, H, W)
    assert fcp_fuse.shape == (N, cp_channel, H, W)
    assert feat_out.shape == (N, cp_channel, H, W)
    assert bool(jnp.all(jnp.isfinite(fsp_out)))
    assert bool(jnp.all(jnp.isfinite(fcp_fuse)))
    assert bool(jnp.all(jnp.isfinite(feat_out)))
    print("KERNEL_OK")
</pallas_src>

<mosaic_0001>
module attributes {stable_mosaic.version = 11 : i64} {
  func.func @_ffm_kernel(%arg0: i32, %arg1: memref<1x16x256xf32, #tpu.memory_space<vmem>>, %arg2: memref<1x8x256xf32, #tpu.memory_space<vmem>>, %arg3: memref<1x1x256xf32, #tpu.memory_space<vmem>>, %arg4: memref<8x16xf32, #tpu.memory_space<vmem>>, %arg5: memref<8x1xf32, #tpu.memory_space<vmem>>, %arg6: memref<8x8xf32, #tpu.memory_space<vmem>>, %arg7: memref<8x8xf32, #tpu.memory_space<vmem>>, %arg8: memref<8x1xf32, #tpu.memory_space<vmem>>, %arg9: memref<8x8xf32, #tpu.memory_space<vmem>>, %arg10: memref<8x1xf32, #tpu.memory_space<vmem>>, %arg11: memref<1x256xi32, #tpu.memory_space<vmem>>, %arg12: memref<1x256xi32, #tpu.memory_space<vmem>>, %arg13: memref<98xf32, #tpu.memory_space<smem>>, %arg14: memref<1xf32, #tpu.memory_space<smem>>, %arg15: memref<1x8x256xf32, #tpu.memory_space<vmem>>, %arg16: memref<1x8x256xf32, #tpu.memory_space<vmem>>, %arg17: memref<1x8x256xf32, #tpu.memory_space<vmem>>) attributes {dimension_semantics = [#tpu.dimension_semantics<parallel>], iteration_bounds = array<i64: 2>, scalar_prefetch = 0 : i64, scratch_operands = 0 : i64, tpu.core_type = #tpu.core_type<tc>, window_params = [{transform_indices = @transform_0, window_bounds = array<i64: 1, 16, 256>}, {transform_indices = @transform_1, window_bounds = array<i64: 1, 8, 256>}, {transform_indices = @transform_2, window_bounds = array<i64: 1, 1, 256>}, {pipeline_mode = #tpu.pipeline_mode<synchronous>, transform_indices = @transform_3, window_bounds = array<i64: 8, 16>}, {pipeline_mode = #tpu.pipeline_mode<synchronous>, transform_indices = @transform_4, window_bounds = array<i64: 8, 1>}, {pipeline_mode = #tpu.pipeline_mode<synchronous>, transform_indices = @transform_5, window_bounds = array<i64: 8, 8>}, {pipeline_mode = #tpu.pipeline_mode<synchronous>, transform_indices = @transform_6, window_bounds = array<i64: 8, 8>}, {pipeline_mode = #tpu.pipeline_mode<synchronous>, transform_indices = @transform_7, window_bounds = array<i64: 8, 1>}, {pipeline_mode = #tpu.pipeline_mode<synchronous>, transform_indices = @transform_8, window_bounds = array<i64: 8, 8>}, {pipeline_mode = #tpu.pipeline_mode<synchronous>, transform_indices = @transform_9, window_bounds = array<i64: 8, 1>}, {pipeline_mode = #tpu.pipeline_mode<synchronous>, transform_indices = @transform_10, window_bounds = array<i64: 1, 256>}, {pipeline_mode = #tpu.pipeline_mode<synchronous>, transform_indices = @transform_11, window_bounds = array<i64: 1, 256>}, {transform_indices = @transform_12, window_bounds = array<i64: 98>}, {transform_indices = @transform_13, window_bounds = array<i64: 1>}, {transform_indices = @transform_14, window_bounds = array<i64: 1, 8, 256>}, {transform_indices = @transform_15, window_bounds = array<i64: 1, 8, 256>}, {transform_indices = @transform_16, window_bounds = array<i64: 1, 8, 256>}]} {
    %c0 = arith.constant 0 : index
    %c0_0 = arith.constant 0 : index
    %c0_1 = arith.constant 0 : index
    %0 = vector.load %arg1[%c0, %c0_0, %c0_1] : memref<1x16x256xf32, #tpu.memory_space<vmem>>, vector<1x16x256xf32>
    %1 = vector.shape_cast %0 : vector<1x16x256xf32> to vector<16x256xf32>
    %c0_2 = arith.constant 0 : index
    %c0_3 = arith.constant 0 : index
    %c0_4 = arith.constant 0 : index
    %2 = vector.load %arg2[%c0_2, %c0_3, %c0_4] : memref<1x8x256xf32, #tpu.memory_space<vmem>>, vector<1x8x256xf32>
    %3 = vector.shape_cast %2 : vector<1x8x256xf32> to vector<8x256xf32>
    %c0_5 = arith.constant 0 : index
    %c0_6 = arith.constant 0 : index
    %c0_7 = arith.constant 0 : index
    %4 = vector.load %arg3[%c0_5, %c0_6, %c0_7] : memref<1x1x256xf32, #tpu.memory_space<vmem>>, vector<1x1x256xf32>
    %5 = vector.shape_cast %4 : vector<1x1x256xf32> to vector<1x256xf32>
    %cst = arith.constant 0.000000e+00 : f32
    %6 = vector.broadcast %cst : f32 to vector<1x256xf32>
    %7 = arith.cmpf ogt, %5, %6 : vector<1x256xf32>
    %8 = arith.extui %7 : vector<1x256xi1> to vector<1x256xi32>
    %9 = arith.sitofp %8 : vector<1x256xi32> to vector<1x256xf32>
    %cst_8 = arith.constant 1.000000e+00 : f32
    %10 = vector.broadcast %cst_8 : f32 to vector<1x256xf32>
    %11 = arith.subf %10, %9 : vector<1x256xf32>
    %c0_9 = arith.constant 0 : index
    %c0_10 = arith.constant 0 : index
    %12 = vector.load %arg4[%c0_9, %c0_10] : memref<8x16xf32, #tpu.memory_space<vmem>>, vector<8x16xf32>
    %cst_11 = arith.constant dense<0.000000e+00> : vector<8x256xf32>
    %13 = tpu.matmul %12, %1, %cst_11 {dimension_numbers = #tpu.dot_dimension_numbers<[1], [0], [0], [1], [0, 0, 1, 1], [], []>} : vector<8x16xf32>, vector<16x256xf32>, vector<8x256xf32> -> vector<8x256xf32>
    %c0_12 = arith.constant 0 : index
    %c0_13 = arith.constant 0 : index
    %14 = vector.load %arg5[%c0_12, %c0_13] : memref<8x1xf32, #tpu.memory_space<vmem>>, vector<8x1xf32>
    %15 = vector.broadcast %14 : vector<8x1xf32> to vector<8x256xf32>
    %16 = arith.addf %13, %15 : vector<8x256xf32>
    %17 = vector.broadcast %11 : vector<1x256xf32> to vector<8x256xf32>
    %18 = arith.mulf %3, %17 : vector<8x256xf32>
    %19 = vector.broadcast %9 : vector<1x256xf32> to vector<8x256xf32>
    %20 = arith.mulf %16, %19 : vector<8x256xf32>
    %21 = arith.addf %18, %20 : vector<8x256xf32>
    %c0_14 = arith.constant 0 : index
    %c0_15 = arith.constant 0 : index
    %22 = vector.load %arg6[%c0_14, %c0_15] : memref<8x8xf32, #tpu.memory_space<vmem>>, vector<8x8xf32>
    %cst_16 = arith.constant dense<0.000000e+00> : vector<8x256xf32>
    %23 = tpu.matmul %22, %16, %cst_16 {dimension_numbers = #tpu.dot_dimension_numbers<[1], [0], [0], [1], [0, 0, 1, 1], [], []>} : vector<8x8xf32>, vector<8x256xf32>, vector<8x256xf32> -> vector<8x256xf32>
    %c0_17 = arith.constant 0 : index
    %c0_18 = arith.constant 0 : index
    %24 = vector.load %arg7[%c0_17, %c0_18] : memref<8x8xf32, #tpu.memory_space<vmem>>, vector<8x8xf32>
    %cst_19 = arith.constant dense<0.000000e+00> : vector<8x256xf32>
    %25 = tpu.matmul %24, %21, %cst_19 {dimension_numbers = #tpu.dot_dimension_numbers<[1], [0], [0], [1], [0, 0, 1, 1], [], []>} : vector<8x8xf32>, vector<8x256xf32>, vector<8x256xf32> -> vector<8x256xf32>
    %26 = arith.addf %23, %25 : vector<8x256xf32>
    %c0_20 = arith.constant 0 : index
    %c0_21 = arith.constant 0 : index
    %27 = vector.load %arg8[%c0_20, %c0_21] : memref<8x1xf32, #tpu.memory_space<vmem>>, vector<8x1xf32>
    %28 = vector.broadcast %27 : vector<8x1xf32> to vector<8x256xf32>
    %29 = arith.addf %26, %28 : vector<8x256xf32>
    %cst_22 = arith.constant 0.000000e+00 : f32
    %30 = vector.broadcast %cst_22 : f32 to vector<8x256xf32>
    %31 = arith.maximumf %29, %30 : vector<8x256xf32>
    %cst_23 = arith.constant dense<0.000000e+00> : vector<8xf32>
    %32 = vector.multi_reduction <add>, %31, %cst_23 [1] : vector<8x256xf32> to vector<8xf32>
    %33 = vector.shape_cast %32 : vector<8xf32> to vector<8x1xf32>
    %cst_24 = arith.constant 2.560000e+02 : f32
    %34 = vector.broadcast %cst_24 : f32 to vector<8x1xf32>
    %35 = arith.divf %33, %34 : vector<8x1xf32>
    %c0_25 = arith.constant 0 : index
    %c0_26 = arith.constant 0 : index
    %36 = vector.load %arg9[%c0_25, %c0_26] : memref<8x8xf32, #tpu.memory_space<vmem>>, vector<8x8xf32>
    %cst_27 = arith.constant dense<0.000000e+00> : vector<8x1xf32>
    %37 = tpu.matmul %36, %35, %cst_27 {dimension_numbers = #tpu.dot_dimension_numbers<[1], [0], [0], [1], [0, 0, 1, 1], [], []>} : vector<8x8xf32>, vector<8x1xf32>, vector<8x1xf32> -> vector<8x1xf32>
    %c0_28 = arith.constant 0 : index
    %c0_29 = arith.constant 0 : index
    %38 = vector.load %arg10[%c0_28, %c0_29] : memref<8x1xf32, #tpu.memory_space<vmem>>, vector<8x1xf32>
    %39 = arith.addf %37, %38 : vector<8x1xf32>
    %40 = arith.negf %39 : vector<8x1xf32>
    %41 = math.exp %40 : vector<8x1xf32>
    %cst_30 = arith.constant 1.000000e+00 : f32
    %42 = vector.broadcast %cst_30 : f32 to vector<8x1xf32>
    %43 = arith.addf %42, %41 : vector<8x1xf32>
    %44 = arith.divf %42, %43 : vector<8x1xf32>
    %cst_31 = arith.constant 1.000000e+00 : f32
    %45 = vector.broadcast %cst_31 : f32 to vector<8x1xf32>
    %46 = arith.addf %44, %45 : vector<8x1xf32>
    %47 = vector.broadcast %46 : vector<8x1xf32> to vector<8x256xf32>
    %48 = arith.mulf %31, %47 : vector<8x256xf32>
    %cst_32 = arith.constant dense<0xFF800000> : vector<256xf32>
    %49 = vector.multi_reduction <maximumf>, %48, %cst_32 [0] : vector<8x256xf32> to vector<256xf32>
    %50 = vector.shape_cast %49 : vector<256xf32> to vector<1x256xf32>
    %cst_33 = arith.constant dense<0.000000e+00> : vector<256xf32>
    %51 = vector.multi_reduction <add>, %48, %cst_33 [0] : vector<8x256xf32> to vector<256xf32>
    %52 = vector.shape_cast %51 : vector<256xf32> to vector<1x256xf32>
    %cst_34 = arith.constant 8.000000e+00 : f32
    %53 = vector.broadcast %cst_34 : f32 to vector<1x256xf32>
    %54 = arith.divf %52, %53 : vector<1x256xf32>
    %c0_35 = arith.constant 0 : index
    %c0_36 = arith.constant 0 : index
    %55 = vector.load %arg11[%c0_35, %c0_36] : memref<1x256xi32, #tpu.memory_space<vmem>>, vector<1x256xi32>
    %c0_37 = arith.constant 0 : index
    %c0_38 = arith.constant 0 : index
    %56 = vector.load %arg12[%c0_37, %c0_38] : memref<1x256xi32, #tpu.memory_space<vmem>>, vector<1x256xi32>
    %c3_i32 = arith.constant 3 : i32
    %57 = vector.broadcast %c3_i32 : i32 to vector<1x256xi32>
    %58 = arith.cmpi sge, %55, %57 : vector<1x256xi32>
    %c19_i32 = arith.constant 19 : i32
    %59 = vector.broadcast %c19_i32 : i32 to vector<1x256xi32>
    %60 = arith.cmpi slt, %55, %59 : vector<1x256xi32>
    %61 = arith.andi %58, %60 : vector<1x256xi1>
    %c2_i32 = arith.constant 2 : i32
    %62 = vector.broadcast %c2_i32 : i32 to vector<1x256xi32>
    %63 = arith.cmpi sge, %55, %62 : vector<1x256xi32>
    %c18_i32 = arith.constant 18 : i32
    %64 = vector.broadcast %c18_i32 : i32 to vector<1x256xi32>
    %65 = arith.cmpi slt, %55, %64 : vector<1x256xi32>
    %66 = arith.andi %63, %65 : vector<1x256xi1>
    %c1_i32 = arith.constant 1 : i32
    %67 = vector.broadcast %c1_i32 : i32 to vector<1x256xi32>
    %68 = arith.cmpi sge, %55, %67 : vector<1x256xi32>
    %c17_i32 = arith.constant 17 : i32
    %69 = vector.broadcast %c17_i32 : i32 to vector<1x256xi32>
    %70 = arith.cmpi slt, %55, %69 : vector<1x256xi32>
    %71 = arith.andi %68, %70 : vector<1x256xi1>
    %c0_i32 = arith.constant 0 : i32
    %72 = vector.broadcast %c0_i32 : i32 to vector<1x256xi32>
    %73 = arith.cmpi sge, %55, %72 : vector<1x256xi32>
    %c16_i32 = arith.constant 16 : i32
    %74 = vector.broadcast %c16_i32 : i32 to vector<1x256xi32>
    %75 = arith.cmpi slt, %55, %74 : vector<1x256xi32>
    %76 = arith.andi %73, %75 : vector<1x256xi1>
    %c-1_i32 = arith.constant -1 : i32
    %77 = vector.broadcast %c-1_i32 : i32 to vector<1x256xi32>
    %78 = arith.cmpi sge, %55, %77 : vector<1x256xi32>
    %c15_i32 = arith.constant 15 : i32
    %79 = vector.broadcast %c15_i32 : i32 to vector<1x256xi32>
    %80 = arith.cmpi slt, %55, %79 : vector<1x256xi32>
    %81 = arith.andi %78, %80 : vector<1x256xi1>
    %c-2_i32 = arith.constant -2 : i32
    %82 = vector.broadcast %c-2_i32 : i32 to vector<1x256xi32>
    %83 = arith.cmpi sge, %55, %82 : vector<1x256xi32>
    %c14_i32 = arith.constant 14 : i32
    %84 = vector.broadcast %c14_i32 : i32 to vector<1x256xi32>
    %85 = arith.cmpi slt, %55, %84 : vector<1x256xi32>
    %86 = arith.andi %83, %85 : vector<1x256xi1>
    %c-3_i32 = arith.constant -3 : i32
    %87 = vector.broadcast %c-3_i32 : i32 to vector<1x256xi32>
    %88 = arith.cmpi sge, %55, %87 : vector<1x256xi32>
    %c13_i32 = arith.constant 13 : i32
    %89 = vector.broadcast %c13_i32 : i32 to vector<1x256xi32>
    %90 = arith.cmpi slt, %55, %89 : vector<1x256xi32>
    %91 = arith.andi %88, %90 : vector<1x256xi1>
    %c3_i32_39 = arith.constant 3 : i32
    %92 = vector.broadcast %c3_i32_39 : i32 to vector<1x256xi32>
    %93 = arith.cmpi sge, %56, %92 : vector<1x256xi32>
    %c19_i32_40 = arith.constant 19 : i32
    %94 = vector.broadcast %c19_i32_40 : i32 to vector<1x256xi32>
    %95 = arith.cmpi slt, %56, %94 : vector<1x256xi32>
    %96 = arith.andi %93, %95 : vector<1x256xi1>
    %c2_i32_41 = arith.constant 2 : i32
    %97 = vector.broadcast %c2_i32_41 : i32 to vector<1x256xi32>
    %98 = arith.cmpi sge, %56, %97 : vector<1x256xi32>
    %c18_i32_42 = arith.constant 18 : i32
    %99 = vector.broadcast %c18_i32_42 : i32 to vector<1x256xi32>
    %100 = arith.cmpi slt, %56, %99 : vector<1x256xi32>
    %101 = arith.andi %98, %100 : vector<1x256xi1>
    %c1_i32_43 = arith.constant 1 : i32
    %102 = vector.broadcast %c1_i32_43 : i32 to vector<1x256xi32>
    %103 = arith.cmpi sge, %56, %102 : vector<1x256xi32>
    %c17_i32_44 = arith.constant 17 : i32
    %104 = vector.broadcast %c17_i32_44 : i32 to vector<1x256xi32>
    %105 = arith.cmpi slt, %56, %104 : vector<1x256xi32>
    %106 = arith.andi %103, %105 : vector<1x256xi1>
    %c0_i32_45 = arith.constant 0 : i32
    %107 = vector.broadcast %c0_i32_45 : i32 to vector<1x256xi32>
    %108 = arith.cmpi sge, %56, %107 : vector<1x256xi32>
    %c16_i32_46 = arith.constant 16 : i32
    %109 = vector.broadcast %c16_i32_46 : i32 to vector<1x256xi32>
    %110 = arith.cmpi slt, %56, %109 : vector<1x256xi32>
    %111 = arith.andi %108, %110 : vector<1x256xi1>
    %c-1_i32_47 = arith.constant -1 : i32
    %112 = vector.broadcast %c-1_i32_47 : i32 to vector<1x256xi32>
    %113 = arith.cmpi sge, %56, %112 : vector<1x256xi32>
    %c15_i32_48 = arith.constant 15 : i32
    %114 = vector.broadcast %c15_i32_48 : i32 to vector<1x256xi32>
    %115 = arith.cmpi slt, %56, %114 : vector<1x256xi32>
    %116 = arith.andi %113, %115 : vector<1x256xi1>
    %c-2_i32_49 = arith.constant -2 : i32
    %117 = vector.broadcast %c-2_i32_49 : i32 to vector<1x256xi32>
    %118 = arith.cmpi sge, %56, %117 : vector<1x256xi32>
    %c14_i32_50 = arith.constant 14 : i32
    %119 = vector.broadcast %c14_i32_50 : i32 to vector<1x256xi32>
    %120 = arith.cmpi slt, %56, %119 : vector<1x256xi32>
    %121 = arith.andi %118, %120 : vector<1x256xi1>
    %c-3_i32_51 = arith.constant -3 : i32
    %122 = vector.broadcast %c-3_i32_51 : i32 to vector<1x256xi32>
    %123 = arith.cmpi sge, %56, %122 : vector<1x256xi32>
    %c13_i32_52 = arith.constant 13 : i32
    %124 = vector.broadcast %c13_i32_52 : i32 to vector<1x256xi32>
    %125 = arith.cmpi slt, %56, %124 : vector<1x256xi32>
    %126 = arith.andi %123, %125 : vector<1x256xi1>
    %cst_53 = arith.constant 0.000000e+00 : f32
    %127 = vector.broadcast %cst_53 : f32 to vector<1x256xf32>
    %c0_54 = arith.constant 0 : index
    %128 = memref.load %arg14[%c0_54] : memref<1xf32, #tpu.memory_space<smem>>
    %129 = vector.broadcast %128 : f32 to vector<1x256xf32>
    %130 = arith.addf %127, %129 : vector<1x256xf32>
    %c0_55 = arith.constant 0 : index
    %131 = memref.load %arg13[%c0_55] : memref<98xf32, #tpu.memory_space<smem>>
    %132 = vector.broadcast %131 : f32 to vector<1x256xf32>
    %133 = arith.mulf %50, %132 : vector<1x256xf32>
    %c1 = arith.constant 1 : index
    %134 = memref.load %arg13[%c1] : memref<98xf32, #tpu.memory_space<smem>>
    %135 = vector.broadcast %134 : f32 to vector<1x256xf32>
    %136 = arith.mulf %54, %135 : vector<1x256xf32>
    %137 = arith.addf %133, %136 : vector<1x256xf32>
    %c51_i32 = arith.constant 51 : i32
    %138 = tpu.dynamic_rotate %137 by %c51_i32 dim 1 : vector<1x256xf32>, i32 -> vector<1x256xf32>
    %139 = arith.andi %61, %96 : vector<1x256xi1>
    %cst_56 = arith.constant 0.000000e+00 : f32
    %140 = vector.broadcast %cst_56 : f32 to vector<1x256xf32>
    %141 = arith.select %139, %138, %140 : vector<1x256xi1>, vector<1x256xf32>
    %142 = arith.addf %130, %141 : vector<1x256xf32>
    %c2 = arith.constant 2 : index
    %143 = memref.load %arg13[%c2] : memref<98xf32, #tpu.memory_space<smem>>
    %144 = vector.broadcast %143 : f32 to vector<1x256xf32>
    %145 = arith.mulf %50, %144 : vector<1x256xf32>
    %c3 = arith.constant 3 : index
    %146 = memref.load %arg13[%c3] : memref<98xf32, #tpu.memory_space<smem>>
    %147 = vector.broadcast %146 : f32 to vector<1x256xf32>
    %148 = arith.mulf %54, %147 : vector<1x256xf32>
    %149 = arith.addf %145, %148 : vector<1x256xf32>
    %c50_i32 = arith.constant 50 : i32
    %150 = tpu.dynamic_rotate %149 by %c50_i32 dim 1 : vector<1x256xf32>, i32 -> vector<1x256xf32>
    %151 = arith.andi %61, %101 : vector<1x256xi1>
    %cst_57 = arith.constant 0.000000e+00 : f32
    %152 = vector.broadcast %cst_57 : f32 to vector<1x256xf32>
    %153 = arith.select %151, %150, %152 : vector<1x256xi1>, vector<1x256xf32>
    %154 = arith.addf %142, %153 : vector<1x256xf32>
    %c4 = arith.constant 4 : index
    %155 = memref.load %arg13[%c4] : memref<98xf32, #tpu.memory_space<smem>>
    %156 = vector.broadcast %155 : f32 to vector<1x256xf32>
    %157 = arith.mulf %50, %156 : vector<1x256xf32>
    %c5 = arith.constant 5 : index
    %158 = memref.load %arg13[%c5] : memref<98xf32, #tpu.memory_space<smem>>
    %159 = vector.broadcast %158 : f32 to vector<1x256xf32>
    %160 = arith.mulf %54, %159 : vector<1x256xf32>
    %161 = arith.addf %157, %160 : vector<1x256xf32>
    %c49_i32 = arith.constant 49 : i32
    %162 = tpu.dynamic_rotate %161 by %c49_i32 dim 1 : vector<1x256xf32>, i32 -> vector<1x256xf32>
    %163 = arith.andi %61, %106 : vector<1x256xi1>
    %cst_58 = arith.constant 0.000000e+00 : f32
    %164 = vector.broadcast %cst_58 : f32 to vector<1x256xf32>
    %165 = arith.select %163, %162, %164 : vector<1x256xi1>, vector<1x256xf32>
    %166 = arith.addf %154, %165 : vector<1x256xf32>
    %c6 = arith.constant 6 : index
    %167 = memref.load %arg13[%c6] : memref<98xf32, #tpu.memory_space<smem>>
    %168 = vector.broadcast %167 : f32 to vector<1x256xf32>
    %169 = arith.mulf %50, %168 : vector<1x256xf32>
    %c7 = arith.constant 7 : index
    %170 = memref.load %arg13[%c7] : memref<98xf32, #tpu.memory_space<smem>>
    %171 = vector.broadcast %170 : f32 to vector<1x256xf32>
    %172 = arith.mulf %54, %171 : vector<1x256xf32>
    %173 = arith.addf %169, %172 : vector<1x256xf32>
    %c48_i32 = arith.constant 48 : i32
    %174 = tpu.dynamic_rotate %173 by %c48_i32 dim 1 : vector<1x256xf32>, i32 -> vector<1x256xf32>
    %175 = arith.andi %61, %111 : vector<1x256xi1>
    %cst_59 = arith.constant 0.000000e+00 : f32
    %176 = vector.broadcast %cst_59 : f32 to vector<1x256xf32>
    %177 = arith.select %175, %174, %176 : vector<1x256xi1>, vector<1x256xf32>
    %178 = arith.addf %166, %177 : vector<1x256xf32>
    %c8 = arith.constant 8 : index
    %179 = memref.load %arg13[%c8] : memref<98xf32, #tpu.memory_space<smem>>
    %180 = vector.broadcast %179 : f32 to vector<1x256xf32>
    %181 = arith.mulf %50, %180 : vector<1x256xf32>
    %c9 = arith.constant 9 : index
    %182 = memref.load %arg13[%c9] : memref<98xf32, #tpu.memory_space<smem>>
    %183 = vector.broadcast %182 : f32 to vector<1x256xf32>
    %184 = arith.mulf %54, %183 : vector<1x256xf32>
    %185 = arith.addf %181, %184 : vector<1x256xf32>
    %c47_i32 = arith.constant 47 : i32
    %186 = tpu.dynamic_rotate %185 by %c47_i32 dim 1 : vector<1x256xf32>, i32 -> vector<1x256xf32>
    %187 = arith.andi %61, %116 : vector<1x256xi1>
    %cst_60 = arith.constant 0.000000e+00 : f32
    %188 = vector.broadcast %cst_60 : f32 to vector<1x256xf32>
    %189 = arith.select %187, %186, %188 : vector<1x256xi1>, vector<1x256xf32>
    %190 = arith.addf %178, %189 : vector<1x256xf32>
    %c10 = arith.constant 10 : index
    %191 = memref.load %arg13[%c10] : memref<98xf32, #tpu.memory_space<smem>>
    %192 = vector.broadcast %191 : f32 to vector<1x256xf32>
    %193 = arith.mulf %50, %192 : vector<1x256xf32>
    %c11 = arith.constant 11 : index
    %194 = memref.load %arg13[%c11] : memref<98xf32, #tpu.memory_space<smem>>
    %195 = vector.broadcast %194 : f32 to vector<1x256xf32>
    %196 = arith.mulf %54, %195 : vector<1x256xf32>
    %197 = arith.addf %193, %196 : vector<1x256xf32>
    %c46_i32 = arith.constant 46 : i32
    %198 = tpu.dynamic_rotate %197 by %c46_i32 dim 1 : vector<1x256xf32>, i32 -> vector<1x256xf32>
    %199 = arith.andi %61, %121 : vector<1x256xi1>
    %cst_61 = arith.constant 0.000000e+00 : f32
    %200 = vector.broadcast %cst_61 : f32 to vector<1x256xf32>
    %201 = arith.select %199, %198, %200 : vector<1x256xi1>, vector<1x256xf32>
    %202 = arith.addf %190, %201 : vector<1x256xf32>
    %c12 = arith.constant 12 : index
    %203 = memref.load %arg13[%c12] : memref<98xf32, #tpu.memory_space<smem>>
    %204 = vector.broadcast %203 : f32 to vector<1x256xf32>
    %205 = arith.mulf %50, %204 : vector<1x256xf32>
    %c13 = arith.constant 13 : index
    %206 = memref.load %arg13[%c13] : memref<98xf32, #tpu.memory_space<smem>>
    %207 = vector.broadcast %206 : f32 to vector<1x256xf32>
    %208 = arith.mulf %54, %207 : vector<1x256xf32>
    %209 = arith.addf %205, %208 : vector<1x256xf32>
    %c45_i32 = arith.constant 45 : i32
    %210 = tpu.dynamic_rotate %209 by %c45_i32 dim 1 : vector<1x256xf32>, i32 -> vector<1x256xf32>
    %211 = arith.andi %61, %126 : vector<1x256xi1>
    %cst_62 = arith.constant 0.000000e+00 : f32
    %212 = vector.broadcast %cst_62 : f32 to vector<1x256xf32>
    %213 = arith.select %211, %210, %212 : vector<1x256xi1>, vector<1x256xf32>
    %214 = arith.addf %202, %213 : vector<1x256xf32>
    %c14 = arith.constant 14 : index
    %215 = memref.load %arg13[%c14] : memref<98xf32, #tpu.memory_space<smem>>
    %216 = vector.broadcast %215 : f32 to vector<1x256xf32>
    %217 = arith.mulf %50, %216 : vector<1x256xf32>
    %c15 = arith.constant 15 : index
    %218 = memref.load %arg13[%c15] : memref<98xf32, #tpu.memory_space<smem>>
    %219 = vector.broadcast %218 : f32 to vector<1x256xf32>
    %220 = arith.mulf %54, %219 : vector<1x256xf32>
    %221 = arith.addf %217, %220 : vector<1x256xf32>
    %c35_i32 = arith.constant 35 : i32
    %222 = tpu.dynamic_rotate %221 by %c35_i32 dim 1 : vector<1x256xf32>, i32 -> vector<1x256xf32>
    %223 = arith.andi %66, %96 : vector<1x256xi1>
    %cst_63 = arith.constant 0.000000e+00 : f32
    %224 = vector.broadcast %cst_63 : f32 to vector<1x256xf32>
    %225 = arith.select %223, %222, %224 : vector<1x256xi1>, vector<1x256xf32>
    %226 = arith.addf %214, %225 : vector<1x256xf32>
    %c16 = arith.constant 16 : index
    %227 = memref.load %arg13[%c16] : memref<98xf32, #tpu.memory_space<smem>>
    %228 = vector.broadcast %227 : f32 to vector<1x256xf32>
    %229 = arith.mulf %50, %228 : vector<1x256xf32>
    %c17 = arith.constant 17 : index
    %230 = memref.load %arg13[%c17] : memref<98xf32, #tpu.memory_space<smem>>
    %231 = vector.broadcast %230 : f32 to vector<1x256xf32>
    %232 = arith.mulf %54, %231 : vector<1x256xf32>
    %233 = arith.addf %229, %232 : vector<1x256xf32>
    %c34_i32 = arith.constant 34 : i32
    %234 = tpu.dynamic_rotate %233 by %c34_i32 dim 1 : vector<1x256xf32>, i32 -> vector<1x256xf32>
    %235 = arith.andi %66, %101 : vector<1x256xi1>
    %cst_64 = arith.constant 0.000000e+00 : f32
    %236 = vector.broadcast %cst_64 : f32 to vector<1x256xf32>
    %237 = arith.select %235, %234, %236 : vector<1x256xi1>, vector<1x256xf32>
    %238 = arith.addf %226, %237 : vector<1x256xf32>
    %c18 = arith.constant 18 : index
    %239 = memref.load %arg13[%c18] : memref<98xf32, #tpu.memory_space<smem>>
    %240 = vector.broadcast %239 : f32 to vector<1x256xf32>
    %241 = arith.mulf %50, %240 : vector<1x256xf32>
    %c19 = arith.constant 19 : index
    %242 = memref.load %arg13[%c19] : memref<98xf32, #tpu.memory_space<smem>>
    %243 = vector.broadcast %242 : f32 to vector<1x256xf32>
    %244 = arith.mulf %54, %243 : vector<1x256xf32>
    %245 = arith.addf %241, %244 : vector<1x256xf32>
    %c33_i32 = arith.constant 33 : i32
    %246 = tpu.dynamic_rotate %245 by %c33_i32 dim 1 : vector<1x256xf32>, i32 -> vector<1x256xf32>
    %247 = arith.andi %66, %106 : vector<1x256xi1>
    %cst_65 = arith.constant 0.000000e+00 : f32
    %248 = vector.broadcast %cst_65 : f32 to vector<1x256xf32>
    %249 = arith.select %247, %246, %248 : vector<1x256xi1>, vector<1x256xf32>
    %250 = arith.addf %238, %249 : vector<1x256xf32>
    %c20 = arith.constant 20 : index
    %251 = memref.load %arg13[%c20] : memref<98xf32, #tpu.memory_space<smem>>
    %252 = vector.broadcast %251 : f32 to vector<1x256xf32>
    %253 = arith.mulf %50, %252 : vector<1x256xf32>
    %c21 = arith.constant 21 : index
    %254 = memref.load %arg13[%c21] : memref<98xf32, #tpu.memory_space<smem>>
    %255 = vector.broadcast %254 : f32 to vector<1x256xf32>
    %256 = arith.mulf %54, %255 : vector<1x256xf32>
    %257 = arith.addf %253, %256 : vector<1x256xf32>
    %c32_i32 = arith.constant 32 : i32
    %258 = tpu.dynamic_rotate %257 by %c32_i32 dim 1 : vector<1x256xf32>, i32 -> vector<1x256xf32>
    %259 = arith.andi %66, %111 : vector<1x256xi1>
    %cst_66 = arith.constant 0.000000e+00 : f32
    %260 = vector.broadcast %cst_66 : f32 to vector<1x256xf32>
    %261 = arith.select %259, %258, %260 : vector<1x256xi1>, vector<1x256xf32>
    %262 = arith.addf %250, %261 : vector<1x256xf32>
    %c22 = arith.constant 22 : index
    %263 = memref.load %arg13[%c22] : memref<98xf32, #tpu.memory_space<smem>>
    %264 = vector.broadcast %263 : f32 to vector<1x256xf32>
    %265 = arith.mulf %50, %264 : vector<1x256xf32>
    %c23 = arith.constant 23 : index
    %266 = memref.load %arg13[%c23] : memref<98xf32, #tpu.memory_space<smem>>
    %267 = vector.broadcast %266 : f32 to vector<1x256xf32>
    %268 = arith.mulf %54, %267 : vector<1x256xf32>
    %269 = arith.addf %265, %268 : vector<1x256xf32>
    %c31_i32 = arith.constant 31 : i32
    %270 = tpu.dynamic_rotate %269 by %c31_i32 dim 1 : vector<1x256xf32>, i32 -> vector<1x256xf32>
    %271 = arith.andi %66, %116 : vector<1x256xi1>
    %cst_67 = arith.constant 0.000000e+00 : f32
    %272 = vector.broadcast %cst_67 : f32 to vector<1x256xf32>
    %273 = arith.select %271, %270, %272 : vector<1x256xi1>, vector<1x256xf32>
    %274 = arith.addf %262, %273 : vector<1x256xf32>
    %c24 = arith.constant 24 : index
    %275 = memref.load %arg13[%c24] : memref<98xf32, #tpu.memory_space<smem>>
    %276 = vector.broadcast %275 : f32 to vector<1x256xf32>
    %277 = arith.mulf %50, %276 : vector<1x256xf32>
    %c25 = arith.constant 25 : index
    %278 = memref.load %arg13[%c25] : memref<98xf32, #tpu.memory_space<smem>>
    %279 = vector.broadcast %278 : f32 to vector<1x256xf32>
    %280 = arith.mulf %54, %279 : vector<1x256xf32>
    %281 = arith.addf %277, %280 : vector<1x256xf32>
    %c30_i32 = arith.constant 30 : i32
    %282 = tpu.dynamic_rotate %281 by %c30_i32 dim 1 : vector<1x256xf32>, i32 -> vector<1x256xf32>
    %283 = arith.andi %66, %121 : vector<1x256xi1>
    %cst_68 = arith.constant 0.000000e+00 : f32
    %284 = vector.broadcast %cst_68 : f32 to vector<1x256xf32>
    %285 = arith.select %283, %282, %284 : vector<1x256xi1>, vector<1x256xf32>
    %286 = arith.addf %274, %285 : vector<1x256xf32>
    %c26 = arith.constant 26 : index
    %287 = memref.load %arg13[%c26] : memref<98xf32, #tpu.memory_space<smem>>
    %288 = vector.broadcast %287 : f32 to vector<1x256xf32>
    %289 = arith.mulf %50, %288 : vector<1x256xf32>
    %c27 = arith.constant 27 : index
    %290 = memref.load %arg13[%c27] : memref<98xf32, #tpu.memory_space<smem>>
    %291 = vector.broadcast %290 : f32 to vector<1x256xf32>
    %292 = arith.mulf %54, %291 : vector<1x256xf32>
    %293 = arith.addf %289, %292 : vector<1x256xf32>
    %c29_i32 = arith.constant 29 : i32
    %294 = tpu.dynamic_rotate %293 by %c29_i32 dim 1 : vector<1x256xf32>, i32 -> vector<1x256xf32>
    %295 = arith.andi %66, %126 : vector<1x256xi1>
    %cst_69 = arith.constant 0.000000e+00 : f32
    %296 = vector.broadcast %cst_69 : f32 to vector<1x256xf32>
    %297 = arith.select %295, %294, %296 : vector<1x256xi1>, vector<1x256xf32>
    %298 = arith.addf %286, %297 : vector<1x256xf32>
    %c28 = arith.constant 28 : index
    %299 = memref.load %arg13[%c28] : memref<98xf32, #tpu.memory_space<smem>>
    %300 = vector.broadcast %299 : f32 to vector<1x256xf32>
    %301 = arith.mulf %50, %300 : vector<1x256xf32>
    %c29 = arith.constant 29 : index
    %302 = memref.load %arg13[%c29] : memref<98xf32, #tpu.memory_space<smem>>
    %303 = vector.broadcast %302 : f32 to vector<1x256xf32>
    %304 = arith.mulf %54, %303 : vector<1x256xf32>
    %305 = arith.addf %301, %304 : vector<1x256xf32>
    %c19_i32_70 = arith.constant 19 : i32
    %306 = tpu.dynamic_rotate %305 by %c19_i32_70 dim 1 : vector<1x256xf32>, i32 -> vector<1x256xf32>
    %307 = arith.andi %71, %96 : vector<1x256xi1>
    %cst_71 = arith.constant 0.000000e+00 : f32
    %308 = vector.broadcast %cst_71 : f32 to vector<1x256xf32>
    %309 = arith.select %307, %306, %308 : vector<1x256xi1>, vector<1x256xf32>
    %310 = arith.addf %298, %309 : vector<1x256xf32>
    %c30 = arith.constant 30 : index
    %311 = memref.load %arg13[%c30] : memref<98xf32, #tpu.memory_space<smem>>
    %312 = vector.broadcast %311 : f32 to vector<1x256xf32>
    %313 = arith.mulf %50, %312 : vector<1x256xf32>
    %c31 = arith.constant 31 : index
    %314 = memref.load %arg13[%c31] : memref<98xf32, #tpu.memory_space<smem>>
    %315 = vector.broadcast %314 : f32 to vector<1x256xf32>
    %316 = arith.mulf %54, %315 : vector<1x256xf32>
    %317 = arith.addf %313, %316 : vector<1x256xf32>
    %c18_i32_72 = arith.constant 18 : i32
    %318 = tpu.dynamic_rotate %317 by %c18_i32_72 dim 1 : vector<1x256xf32>, i32 -> vector<1x256xf32>
    %319 = arith.andi %71, %101 : vector<1x256xi1>
    %cst_73 = arith.constant 0.000000e+00 : f32
    %320 = vector.broadcast %cst_73 : f32 to vector<1x256xf32>
    %321 = arith.select %319, %318, %320 : vector<1x256xi1>, vector<1x256xf32>
    %322 = arith.addf %310, %321 : vector<1x256xf32>
    %c32 = arith.constant 32 : index
    %323 = memref.load %arg13[%c32] : memref<98xf32, #tpu.memory_space<smem>>
    %324 = vector.broadcast %323 : f32 to vector<1x256xf32>
    %325 = arith.mulf %50, %324 : vector<1x256xf32>
    %c33 = arith.constant 33 : index
    %326 = memref.load %arg13[%c33] : memref<98xf32, #tpu.memory_space<smem>>
    %327 = vector.broadcast %326 : f32 to vector<1x256xf32>
    %328 = arith.mulf %54, %327 : vector<1x256xf32>
    %329 = arith.addf %325, %328 : vector<1x256xf32>
    %c17_i32_74 = arith.constant 17 : i32
    %330 = tpu.dynamic_rotate %329 by %c17_i32_74 dim 1 : vector<1x256xf32>, i32 -> vector<1x256xf32>
    %331 = arith.andi %71, %106 : vector<1x256xi1>
    %cst_75 = arith.constant 0.000000e+00 : f32
    %332 = vector.broadcast %cst_75 : f32 to vector<1x256xf32>
    %333 = arith.select %331, %330, %332 : vector<1x256xi1>, vector<1x256xf32>
    %334 = arith.addf %322, %333 : vector<1x256xf32>
    %c34 = arith.constant 34 : index
    %335 = memref.load %arg13[%c34] : memref<98xf32, #tpu.memory_space<smem>>
    %336 = vector.broadcast %335 : f32 to vector<1x256xf32>
    %337 = arith.mulf %50, %336 : vector<1x256xf32>
    %c35 = arith.constant 35 : index
    %338 = memref.load %arg13[%c35] : memref<98xf32, #tpu.memory_space<smem>>
    %339 = vector.broadcast %338 : f32 to vector<1x256xf32>
    %340 = arith.mulf %54, %339 : vector<1x256xf32>
    %341 = arith.addf %337, %340 : vector<1x256xf32>
    %c16_i32_76 = arith.constant 16 : i32
    %342 = tpu.dynamic_rotate %341 by %c16_i32_76 dim 1 : vector<1x256xf32>, i32 -> vector<1x256xf32>
    %343 = arith.andi %71, %111 : vector<1x256xi1>
    %cst_77 = arith.constant 0.000000e+00 : f32
    %344 = vector.broadcast %cst_77 : f32 to vector<1x256xf32>
    %345 = arith.select %343, %342, %344 : vector<1x256xi1>, vector<1x256xf32>
    %346 = arith.addf %334, %345 : vector<1x256xf32>
    %c36 = arith.constant 36 : index
    %347 = memref.load %arg13[%c36] : memref<98xf32, #tpu.memory_space<smem>>
    %348 = vector.broadcast %347 : f32 to vector<1x256xf32>
    %349 = arith.mulf %50, %348 : vector<1x256xf32>
    %c37 = arith.constant 37 : index
    %350 = memref.load %arg13[%c37] : memref<98xf32, #tpu.memory_space<smem>>
    %351 = vector.broadcast %350 : f32 to vector<1x256xf32>
    %352 = arith.mulf %54, %351 : vector<1x256xf32>
    %353 = arith.addf %349, %352 : vector<1x256xf32>
    %c15_i32_78 = arith.constant 15 : i32
    %354 = tpu.dynamic_rotate %353 by %c15_i32_78 dim 1 : vector<1x256xf32>, i32 -> vector<1x256xf32>
    %355 = arith.andi %71, %116 : vector<1x256xi1>
    %cst_79 = arith.constant 0.000000e+00 : f32
    %356 = vector.broadcast %cst_79 : f32 to vector<1x256xf32>
    %357 = arith.select %355, %354, %356 : vector<1x256xi1>, vector<1x256xf32>
    %358 = arith.addf %346, %357 : vector<1x256xf32>
    %c38 = arith.constant 38 : index
    %359 = memref.load %arg13[%c38] : memref<98xf32, #tpu.memory_space<smem>>
    %360 = vector.broadcast %359 : f32 to vector<1x256xf32>
    %361 = arith.mulf %50, %360 : vector<1x256xf32>
    %c39 = arith.constant 39 : index
    %362 = memref.load %arg13[%c39] : memref<98xf32, #tpu.memory_space<smem>>
    %363 = vector.broadcast %362 : f32 to vector<1x256xf32>
    %364 = arith.mulf %54, %363 : vector<1x256xf32>
    %365 = arith.addf %361, %364 : vector<1x256xf32>
    %c14_i32_80 = arith.constant 14 : i32
    %366 = tpu.dynamic_rotate %365 by %c14_i32_80 dim 1 : vector<1x256xf32>, i32 -> vector<1x256xf32>
    %367 = arith.andi %71, %121 : vector<1x256xi1>
    %cst_81 = arith.constant 0.000000e+00 : f32
    %368 = vector.broadcast %cst_81 : f32 to vector<1x256xf32>
    %369 = arith.select %367, %366, %368 : vector<1x256xi1>, vector<1x256xf32>
    %370 = arith.addf %358, %369 : vector<1x256xf32>
    %c40 = arith.constant 40 : index
    %371 = memref.load %arg13[%c40] : memref<98xf32, #tpu.memory_space<smem>>
    %372 = vector.broadcast %371 : f32 to vector<1x256xf32>
    %373 = arith.mulf %50, %372 : vector<1x256xf32>
    %c41 = arith.constant 41 : index
    %374 = memref.load %arg13[%c41] : memref<98xf32, #tpu.memory_space<smem>>
    %375 = vector.broadcast %374 : f32 to vector<1x256xf32>
    %376 = arith.mulf %54, %375 : vector<1x256xf32>
    %377 = arith.addf %373, %376 : vector<1x256xf32>
    %c13_i32_82 = arith.constant 13 : i32
    %378 = tpu.dynamic_rotate %377 by %c13_i32_82 dim 1 : vector<1x256xf32>, i32 -> vector<1x256xf32>
    %379 = arith.andi %71, %126 : vector<1x256xi1>
    %cst_83 = arith.constant 0.000000e+00 : f32
    %380 = vector.broadcast %cst_83 : f32 to vector<1x256xf32>
    %381 = arith.select %379, %378, %380 : vector<1x256xi1>, vector<1x256xf32>
    %382 = arith.addf %370, %381 : vector<1x256xf32>
    %c42 = arith.constant 42 : index
    %383 = memref.load %arg13[%c42] : memref<98xf32, #tpu.memory_space<smem>>
    %384 = vector.broadcast %383 : f32 to vector<1x256xf32>
    %385 = arith.mulf %50, %384 : vector<1x256xf32>
    %c43 = arith.constant 43 : index
    %386 = memref.load %arg13[%c43] : memref<98xf32, #tpu.memory_space<smem>>
    %387 = vector.broadcast %386 : f32 to vector<1x256xf32>
    %388 = arith.mulf %54, %387 : vector<1x256xf32>
    %389 = arith.addf %385, %388 : vector<1x256xf32>
    %c3_i32_84 = arith.constant 3 : i32
    %390 = tpu.dynamic_rotate %389 by %c3_i32_84 dim 1 : vector<1x256xf32>, i32 -> vector<1x256xf32>
    %391 = arith.andi %76, %96 : vector<1x256xi1>
    %cst_85 = arith.constant 0.000000e+00 : f32
    %392 = vector.broadcast %cst_85 : f32 to vector<1x256xf32>
    %393 = arith.select %391, %390, %392 : vector<1x256xi1>, vector<1x256xf32>
    %394 = arith.addf %382, %393 : vector<1x256xf32>
    %c44 = arith.constant 44 : index
    %395 = memref.load %arg13[%c44] : memref<98xf32, #tpu.memory_space<smem>>
    %396 = vector.broadcast %395 : f32 to vector<1x256xf32>
    %397 = arith.mulf %50, %396 : vector<1x256xf32>
    %c45 = arith.constant 45 : index
    %398 = memref.load %arg13[%c45] : memref<98xf32, #tpu.memory_space<smem>>
    %399 = vector.broadcast %398 : f32 to vector<1x256xf32>
    %400 = arith.mulf %54, %399 : vector<1x256xf32>
    %401 = arith.addf %397, %400 : vector<1x256xf32>
    %c2_i32_86 = arith.constant 2 : i32
    %402 = tpu.dynamic_rotate %401 by %c2_i32_86 dim 1 : vector<1x256xf32>, i32 -> vector<1x256xf32>
    %403 = arith.andi %76, %101 : vector<1x256xi1>
    %cst_87 = arith.constant 0.000000e+00 : f32
    %404 = vector.broadcast %cst_87 : f32 to vector<1x256xf32>
    %405 = arith.select %403, %402, %404 : vector<1x256xi1>, vector<1x256xf32>
    %406 = arith.addf %394, %405 : vector<1x256xf32>
    %c46 = arith.constant 46 : index
    %407 = memref.load %arg13[%c46] : memref<98xf32, #tpu.memory_space<smem>>
    %408 = vector.broadcast %407 : f32 to vector<1x256xf32>
    %409 = arith.mulf %50, %408 : vector<1x256xf32>
    %c47 = arith.constant 47 : index
    %410 = memref.load %arg13[%c47] : memref<98xf32, #tpu.memory_space<smem>>
    %411 = vector.broadcast %410 : f32 to vector<1x256xf32>
    %412 = arith.mulf %54, %411 : vector<1x256xf32>
    %413 = arith.addf %409, %412 : vector<1x256xf32>
    %c1_i32_88 = arith.constant 1 : i32
    %414 = tpu.dynamic_rotate %413 by %c1_i32_88 dim 1 : vector<1x256xf32>, i32 -> vector<1x256xf32>
    %415 = arith.andi %76, %106 : vector<1x256xi1>
    %cst_89 = arith.constant 0.000000e+00 : f32
    %416 = vector.broadcast %cst_89 : f32 to vector<1x256xf32>
    %417 = arith.select %415, %414, %416 : vector<1x256xi1>, vector<1x256xf32>
    %418 = arith.addf %406, %417 : vector<1x256xf32>
    %c48 = arith.constant 48 : index
    %419 = memref.load %arg13[%c48] : memref<98xf32, #tpu.memory_space<smem>>
    %420 = vector.broadcast %419 : f32 to vector<1x256xf32>
    %421 = arith.mulf %50, %420 : vector<1x256xf32>
    %c49 = arith.constant 49 : index
    %422 = memref.load %arg13[%c49] : memref<98xf32, #tpu.memory_space<smem>>
    %423 = vector.broadcast %422 : f32 to vector<1x256xf32>
    %424 = arith.mulf %54, %423 : vector<1x256xf32>
    %425 = arith.addf %421, %424 : vector<1x256xf32>
    %426 = arith.andi %76, %111 : vector<1x256xi1>
    %cst_90 = arith.constant 0.000000e+00 : f32
    %427 = vector.broadcast %cst_90 : f32 to vector<1x256xf32>
    %428 = arith.select %426, %425, %427 : vector<1x256xi1>, vector<1x256xf32>
    %429 = arith.addf %418, %428 : vector<1x256xf32>
    %c50 = arith.constant 50 : index
    %430 = memref.load %arg13[%c50] : memref<98xf32, #tpu.memory_space<smem>>
    %431 = vector.broadcast %430 : f32 to vector<1x256xf32>
    %432 = arith.mulf %50, %431 : vector<1x256xf32>
    %c51 = arith.constant 51 : index
    %433 = memref.load %arg13[%c51] : memref<98xf32, #tpu.memory_space<smem>>
    %434 = vector.broadcast %433 : f32 to vector<1x256xf32>
    %435 = arith.mulf %54, %434 : vector<1x256xf32>
    %436 = arith.addf %432, %435 : vector<1x256xf32>
    %c255_i32 = arith.constant 255 : i32
    %437 = tpu.dynamic_rotate %436 by %c255_i32 dim 1 : vector<1x256xf32>, i32 -> vector<1x256xf32>
    %438 = arith.andi %76, %116 : vector<1x256xi1>
    %cst_91 = arith.constant 0.000000e+00 : f32
    %439 = vector.broadcast %cst_91 : f32 to vector<1x256xf32>
    %440 = arith.select %438, %437, %439 : vector<1x256xi1>, vector<1x256xf32>
    %441 = arith.addf %429, %440 : vector<1x256xf32>
    %c52 = arith.constant 52 : index
    %442 = memref.load %arg13[%c52] : memref<98xf32, #tpu.memory_space<smem>>
    %443 = vector.broadcast %442 : f32 to vector<1x256xf32>
    %444 = arith.mulf %50, %443 : vector<1x256xf32>
    %c53 = arith.constant 53 : index
    %445 = memref.load %arg13[%c53] : memref<98xf32, #tpu.memory_space<smem>>
    %446 = vector.broadcast %445 : f32 to vector<1x256xf32>
    %447 = arith.mulf %54, %446 : vector<1x256xf32>
    %448 = arith.addf %444, %447 : vector<1x256xf32>
    %c254_i32 = arith.constant 254 : i32
    %449 = tpu.dynamic_rotate %448 by %c254_i32 dim 1 : vector<1x256xf32>, i32 -> vector<1x256xf32>
    %450 = arith.andi %76, %121 : vector<1x256xi1>
    %cst_92 = arith.constant 0.000000e+00 : f32
    %451 = vector.broadcast %cst_92 : f32 to vector<1x256xf32>
    %452 = arith.select %450, %449, %451 : vector<1x256xi1>, vector<1x256xf32>
    %453 = arith.addf %441, %452 : vector<1x256xf32>
    %c54 = arith.constant 54 : index
    %454 = memref.load %arg13[%c54] : memref<98xf32, #tpu.memory_space<smem>>
    %455 = vector.broadcast %454 : f32 to vector<1x256xf32>
    %456 = arith.mulf %50, %455 : vector<1x256xf32>
    %c55 = arith.constant 55 : index
    %457 = memref.load %arg13[%c55] : memref<98xf32, #tpu.memory_space<smem>>
    %458 = vector.broadcast %457 : f32 to vector<1x256xf32>
    %459 = arith.mulf %54, %458 : vector<1x256xf32>
    %460 = arith.addf %456, %459 : vector<1x256xf32>
    %c253_i32 = arith.constant 253 : i32
    %461 = tpu.dynamic_rotate %460 by %c253_i32 dim 1 : vector<1x256xf32>, i32 -> vector<1x256xf32>
    %462 = arith.andi %76, %126 : vector<1x256xi1>
    %cst_93 = arith.constant 0.000000e+00 : f32
    %463 = vector.broadcast %cst_93 : f32 to vector<1x256xf32>
    %464 = arith.select %462, %461, %463 : vector<1x256xi1>, vector<1x256xf32>
    %465 = arith.addf %453, %464 : vector<1x256xf32>
    %c56 = arith.constant 56 : index
    %466 = memref.load %arg13[%c56] : memref<98xf32, #tpu.memory_space<smem>>
    %467 = vector.broadcast %466 : f32 to vector<1x256xf32>
    %468 = arith.mulf %50, %467 : vector<1x256xf32>
    %c57 = arith.constant 57 : index
    %469 = memref.load %arg13[%c57] : memref<98xf32, #tpu.memory_space<smem>>
    %470 = vector.broadcast %469 : f32 to vector<1x256xf32>
    %471 = arith.mulf %54, %470 : vector<1x256xf32>
    %472 = arith.addf %468, %471 : vector<1x256xf32>
    %c243_i32 = arith.constant 243 : i32
    %473 = tpu.dynamic_rotate %472 by %c243_i32 dim 1 : vector<1x256xf32>, i32 -> vector<1x256xf32>
    %474 = arith.andi %81, %96 : vector<1x256xi1>
    %cst_94 = arith.constant 0.000000e+00 : f32
    %475 = vector.broadcast %cst_94 : f32 to vector<1x256xf32>
    %476 = arith.select %474, %473, %475 : vector<1x256xi1>, vector<1x256xf32>
    %477 = arith.addf %465, %476 : vector<1x256xf32>
    %c58 = arith.constant 58 : index
    %478 = memref.load %arg13[%c58] : memref<98xf32, #tpu.memory_space<smem>>
    %479 = vector.broadcast %478 : f32 to vector<1x256xf32>
    %480 = arith.mulf %50, %479 : vector<1x256xf32>
    %c59 = arith.constant 59 : index
    %481 = memref.load %arg13[%c59] : memref<98xf32, #tpu.memory_space<smem>>
    %482 = vector.broadcast %481 : f32 to vector<1x256xf32>
    %483 = arith.mulf %54, %482 : vector<1x256xf32>
    %484 = arith.addf %480, %483 : vector<1x256xf32>
    %c242_i32 = arith.constant 242 : i32
    %485 = tpu.dynamic_rotate %484 by %c242_i32 dim 1 : vector<1x256xf32>, i32 -> vector<1x256xf32>
    %486 = arith.andi %81, %101 : vector<1x256xi1>
    %cst_95 = arith.constant 0.000000e+00 : f32
    %487 = vector.broadcast %cst_95 : f32 to vector<1x256xf32>
    %488 = arith.select %486, %485, %487 : vector<1x256xi1>, vector<1x256xf32>
    %489 = arith.addf %477, %488 : vector<1x256xf32>
    %c60 = arith.constant 60 : index
    %490 = memref.load %arg13[%c60] : memref<98xf32, #tpu.memory_space<smem>>
    %491 = vector.broadcast %490 : f32 to vector<1x256xf32>
    %492 = arith.mulf %50, %491 : vector<1x256xf32>
    %c61 = arith.constant 61 : index
    %493 = memref.load %arg13[%c61] : memref<98xf32, #tpu.memory_space<smem>>
    %494 = vector.broadcast %493 : f32 to vector<1x256xf32>
    %495 = arith.mulf %54, %494 : vector<1x256xf32>
    %496 = arith.addf %492, %495 : vector<1x256xf32>
    %c241_i32 = arith.constant 241 : i32
    %497 = tpu.dynamic_rotate %496 by %c241_i32 dim 1 : vector<1x256xf32>, i32 -> vector<1x256xf32>
    %498 = arith.andi %81, %106 : vector<1x256xi1>
    %cst_96 = arith.constant 0.000000e+00 : f32
    %499 = vector.broadcast %cst_96 : f32 to vector<1x256xf32>
    %500 = arith.select %498, %497, %499 : vector<1x256xi1>, vector<1x256xf32>
    %501 = arith.addf %489, %500 : vector<1x256xf32>
    %c62 = arith.constant 62 : index
    %502 = memref.load %arg13[%c62] : memref<98xf32, #tpu.memory_space<smem>>
    %503 = vector.broadcast %502 : f32 to vector<1x256xf32>
    %504 = arith.mulf %50, %503 : vector<1x256xf32>
    %c63 = arith.constant 63 : index
    %505 = memref.load %arg13[%c63] : memref<98xf32, #tpu.memory_space<smem>>
    %506 = vector.broadcast %505 : f32 to vector<1x256xf32>
    %507 = arith.mulf %54, %506 : vector<1x256xf32>
    %508 = arith.addf %504, %507 : vector<1x256xf32>
    %c240_i32 = arith.constant 240 : i32
    %509 = tpu.dynamic_rotate %508 by %c240_i32 dim 1 : vector<1x256xf32>, i32 -> vector<1x256xf32>
    %510 = arith.andi %81, %111 : vector<1x256xi1>
    %cst_97 = arith.constant 0.000000e+00 : f32
    %511 = vector.broadcast %cst_97 : f32 to vector<1x256xf32>
    %512 = arith.select %510, %509, %511 : vector<1x256xi1>, vector<1x256xf32>
    %513 = arith.addf %501, %512 : vector<1x256xf32>
    %c64 = arith.constant 64 : index
    %514 = memref.load %arg13[%c64] : memref<98xf32, #tpu.memory_space<smem>>
    %515 = vector.broadcast %514 : f32 to vector<1x256xf32>
    %516 = arith.mulf %50, %515 : vector<1x256xf32>
    %c65 = arith.constant 65 : index
    %517 = memref.load %arg13[%c65] : memref<98xf32, #tpu.memory_space<smem>>
    %518 = vector.broadcast %517 : f32 to vector<1x256xf32>
    %519 = arith.mulf %54, %518 : vector<1x256xf32>
    %520 = arith.addf %516, %519 : vector<1x256xf32>
    %c239_i32 = arith.constant 239 : i32
    %521 = tpu.dynamic_rotate %520 by %c239_i32 dim 1 : vector<1x256xf32>, i32 -> vector<1x256xf32>
    %522 = arith.andi %81, %116 : vector<1x256xi1>
    %cst_98 = arith.constant 0.000000e+00 : f32
    %523 = vector.broadcast %cst_98 : f32 to vector<1x256xf32>
    %524 = arith.select %522, %521, %523 : vector<1x256xi1>, vector<1x256xf32>
    %525 = arith.addf %513, %524 : vector<1x256xf32>
    %c66 = arith.constant 66 : index
    %526 = memref.load %arg13[%c66] : memref<98xf32, #tpu.memory_space<smem>>
    %527 = vector.broadcast %526 : f32 to vector<1x256xf32>
    %528 = arith.mulf %50, %527 : vector<1x256xf32>
    %c67 = arith.constant 67 : index
    %529 = memref.load %arg13[%c67] : memref<98xf32, #tpu.memory_space<smem>>
    %530 = vector.broadcast %529 : f32 to vector<1x256xf32>
    %531 = arith.mulf %54, %530 : vector<1x256xf32>
    %532 = arith.addf %528, %531 : vector<1x256xf32>
    %c238_i32 = arith.constant 238 : i32
    %533 = tpu.dynamic_rotate %532 by %c238_i32 dim 1 : vector<1x256xf32>, i32 -> vector<1x256xf32>
    %534 = arith.andi %81, %121 : vector<1x256xi1>
    %cst_99 = arith.constant 0.000000e+00 : f32
    %535 = vector.broadcast %cst_99 : f32 to vector<1x256xf32>
    %536 = arith.select %534, %533, %535 : vector<1x256xi1>, vector<1x256xf32>
    %537 = arith.addf %525, %536 : vector<1x256xf32>
    %c68 = arith.constant 68 : index
    %538 = memref.load %arg13[%c68] : memref<98xf32, #tpu.memory_space<smem>>
    %539 = vector.broadcast %538 : f32 to vector<1x256xf32>
    %540 = arith.mulf %50, %539 : vector<1x256xf32>
    %c69 = arith.constant 69 : index
    %541 = memref.load %arg13[%c69] : memref<98xf32, #tpu.memory_space<smem>>
    %542 = vector.broadcast %541 : f32 to vector<1x256xf32>
    %543 = arith.mulf %54, %542 : vector<1x256xf32>
    %544 = arith.addf %540, %543 : vector<1x256xf32>
    %c237_i32 = arith.constant 237 : i32
    %545 = tpu.dynamic_rotate %544 by %c237_i32 dim 1 : vector<1x256xf32>, i32 -> vector<1x256xf32>
    %546 = arith.andi %81, %126 : vector<1x256xi1>
    %cst_100 = arith.constant 0.000000e+00 : f32
    %547 = vector.broadcast %cst_100 : f32 to vector<1x256xf32>
    %548 = arith.select %546, %545, %547 : vector<1x256xi1>, vector<1x256xf32>
    %549 = arith.addf %537, %548 : vector<1x256xf32>
    %c70 = arith.constant 70 : index
    %550 = memref.load %arg13[%c70] : memref<98xf32, #tpu.memory_space<smem>>
    %551 = vector.broadcast %550 : f32 to vector<1x256xf32>
    %552 = arith.mulf %50, %551 : vector<1x256xf32>
    %c71 = arith.constant 71 : index
    %553 = memref.load %arg13[%c71] : memref<98xf32, #tpu.memory_space<smem>>
    %554 = vector.broadcast %553 : f32 to vector<1x256xf32>
    %555 = arith.mulf %54, %554 : vector<1x256xf32>
    %556 = arith.addf %552, %555 : vector<1x256xf32>
    %c227_i32 = arith.constant 227 : i32
    %557 = tpu.dynamic_rotate %556 by %c227_i32 dim 1 : vector<1x256xf32>, i32 -> vector<1x256xf32>
    %558 = arith.andi %86, %96 : vector<1x256xi1>
    %cst_101 = arith.constant 0.000000e+00 : f32
    %559 = vector.broadcast %cst_101 : f32 to vector<1x256xf32>
    %560 = arith.select %558, %557, %559 : vector<1x256xi1>, vector<1x256xf32>
    %561 = arith.addf %549, %560 : vector<1x256xf32>
    %c72 = arith.constant 72 : index
    %562 = memref.load %arg13[%c72] : memref<98xf32, #tpu.memory_space<smem>>
    %563 = vector.broadcast %562 : f32 to vector<1x256xf32>
    %564 = arith.mulf %50, %563 : vector<1x256xf32>
    %c73 = arith.constant 73 : index
    %565 = memref.load %arg13[%c73] : memref<98xf32, #tpu.memory_space<smem>>
    %566 = vector.broadcast %565 : f32 to vector<1x256xf32>
    %567 = arith.mulf %54, %566 : vector<1x256xf32>
    %568 = arith.addf %564, %567 : vector<1x256xf32>
    %c226_i32 = arith.constant 226 : i32
    %569 = tpu.dynamic_rotate %568 by %c226_i32 dim 1 : vector<1x256xf32>, i32 -> vector<1x256xf32>
    %570 = arith.andi %86, %101 : vector<1x256xi1>
    %cst_102 = arith.constant 0.000000e+00 : f32
    %571 = vector.broadcast %cst_102 : f32 to vector<1x256xf32>
    %572 = arith.select %570, %569, %571 : vector<1x256xi1>, vector<1x256xf32>
    %573 = arith.addf %561, %572 : vector<1x256xf32>
    %c74 = arith.constant 74 : index
    %574 = memref.load %arg13[%c74] : memref<98xf32, #tpu.memory_space<smem>>
    %575 = vector.broadcast %574 : f32 to vector<1x256xf32>
    %576 = arith.mulf %50, %575 : vector<1x256xf32>
    %c75 = arith.constant 75 : index
    %577 = memref.load %arg13[%c75] : memref<98xf32, #tpu.memory_space<smem>>
    %578 = vector.broadcast %577 : f32 to vector<1x256xf32>
    %579 = arith.mulf %54, %578 : vector<1x256xf32>
    %580 = arith.addf %576, %579 : vector<1x256xf32>
    %c225_i32 = arith.constant 225 : i32
    %581 = tpu.dynamic_rotate %580 by %c225_i32 dim 1 : vector<1x256xf32>, i32 -> vector<1x256xf32>
    %582 = arith.andi %86, %106 : vector<1x256xi1>
    %cst_103 = arith.constant 0.000000e+00 : f32
    %583 = vector.broadcast %cst_103 : f32 to vector<1x256xf32>
    %584 = arith.select %582, %581, %583 : vector<1x256xi1>, vector<1x256xf32>
    %585 = arith.addf %573, %584 : vector<1x256xf32>
    %c76 = arith.constant 76 : index
    %586 = memref.load %arg13[%c76] : memref<98xf32, #tpu.memory_space<smem>>
    %587 = vector.broadcast %586 : f32 to vector<1x256xf32>
    %588 = arith.mulf %50, %587 : vector<1x256xf32>
    %c77 = arith.constant 77 : index
    %589 = memref.load %arg13[%c77] : memref<98xf32, #tpu.memory_space<smem>>
    %590 = vector.broadcast %589 : f32 to vector<1x256xf32>
    %591 = arith.mulf %54, %590 : vector<1x256xf32>
    %592 = arith.addf %588, %591 : vector<1x256xf32>
    %c224_i32 = arith.constant 224 : i32
    %593 = tpu.dynamic_rotate %592 by %c224_i32 dim 1 : vector<1x256xf32>, i32 -> vector<1x256xf32>
    %594 = arith.andi %86, %111 : vector<1x256xi1>
    %cst_104 = arith.constant 0.000000e+00 : f32
    %595 = vector.broadcast %cst_104 : f32 to vector<1x256xf32>
    %596 = arith.select %594, %593, %595 : vector<1x256xi1>, vector<1x256xf32>
    %597 = arith.addf %585, %596 : vector<1x256xf32>
    %c78 = arith.constant 78 : index
    %598 = memref.load %arg13[%c78] : memref<98xf32, #tpu.memory_space<smem>>
    %599 = vector.broadcast %598 : f32 to vector<1x256xf32>
    %600 = arith.mulf %50, %599 : vector<1x256xf32>
    %c79 = arith.constant 79 : index
    %601 = memref.load %arg13[%c79] : memref<98xf32, #tpu.memory_space<smem>>
    %602 = vector.broadcast %601 : f32 to vector<1x256xf32>
    %603 = arith.mulf %54, %602 : vector<1x256xf32>
    %604 = arith.addf %600, %603 : vector<1x256xf32>
    %c223_i32 = arith.constant 223 : i32
    %605 = tpu.dynamic_rotate %604 by %c223_i32 dim 1 : vector<1x256xf32>, i32 -> vector<1x256xf32>
    %606 = arith.andi %86, %116 : vector<1x256xi1>
    %cst_105 = arith.constant 0.000000e+00 : f32
    %607 = vector.broadcast %cst_105 : f32 to vector<1x256xf32>
    %608 = arith.select %606, %605, %607 : vector<1x256xi1>, vector<1x256xf32>
    %609 = arith.addf %597, %608 : vector<1x256xf32>
    %c80 = arith.constant 80 : index
    %610 = memref.load %arg13[%c80] : memref<98xf32, #tpu.memory_space<smem>>
    %611 = vector.broadcast %610 : f32 to vector<1x256xf32>
    %612 = arith.mulf %50, %611 : vector<1x256xf32>
    %c81 = arith.constant 81 : index
    %613 = memref.load %arg13[%c81] : memref<98xf32, #tpu.memory_space<smem>>
    %614 = vector.broadcast %613 : f32 to vector<1x256xf32>
    %615 = arith.mulf %54, %614 : vector<1x256xf32>
    %616 = arith.addf %612, %615 : vector<1x256xf32>
    %c222_i32 = arith.constant 222 : i32
    %617 = tpu.dynamic_rotate %616 by %c222_i32 dim 1 : vector<1x256xf32>, i32 -> vector<1x256xf32>
    %618 = arith.andi %86, %121 : vector<1x256xi1>
    %cst_106 = arith.constant 0.000000e+00 : f32
    %619 = vector.broadcast %cst_106 : f32 to vector<1x256xf32>
    %620 = arith.select %618, %617, %619 : vector<1x256xi1>, vector<1x256xf32>
    %621 = arith.addf %609, %620 : vector<1x256xf32>
    %c82 = arith.constant 82 : index
    %622 = memref.load %arg13[%c82] : memref<98xf32, #tpu.memory_space<smem>>
    %623 = vector.broadcast %622 : f32 to vector<1x256xf32>
    %624 = arith.mulf %50, %623 : vector<1x256xf32>
    %c83 = arith.constant 83 : index
    %625 = memref.load %arg13[%c83] : memref<98xf32, #tpu.memory_space<smem>>
    %626 = vector.broadcast %625 : f32 to vector<1x256xf32>
    %627 = arith.mulf %54, %626 : vector<1x256xf32>
    %628 = arith.addf %624, %627 : vector<1x256xf32>
    %c221_i32 = arith.constant 221 : i32
    %629 = tpu.dynamic_rotate %628 by %c221_i32 dim 1 : vector<1x256xf32>, i32 -> vector<1x256xf32>
    %630 = arith.andi %86, %126 : vector<1x256xi1>
    %cst_107 = arith.constant 0.000000e+00 : f32
    %631 = vector.broadcast %cst_107 : f32 to vector<1x256xf32>
    %632 = arith.select %630, %629, %631 : vector<1x256xi1>, vector<1x256xf32>
    %633 = arith.addf %621, %632 : vector<1x256xf32>
    %c84 = arith.constant 84 : index
    %634 = memref.load %arg13[%c84] : memref<98xf32, #tpu.memory_space<smem>>
    %635 = vector.broadcast %634 : f32 to vector<1x256xf32>
    %636 = arith.mulf %50, %635 : vector<1x256xf32>
    %c85 = arith.constant 85 : index
    %637 = memref.load %arg13[%c85] : memref<98xf32, #tpu.memory_space<smem>>
    %638 = vector.broadcast %637 : f32 to vector<1x256xf32>
    %639 = arith.mulf %54, %638 : vector<1x256xf32>
    %640 = arith.addf %636, %639 : vector<1x256xf32>
    %c211_i32 = arith.constant 211 : i32
    %641 = tpu.dynamic_rotate %640 by %c211_i32 dim 1 : vector<1x256xf32>, i32 -> vector<1x256xf32>
    %642 = arith.andi %91, %96 : vector<1x256xi1>
    %cst_108 = arith.constant 0.000000e+00 : f32
    %643 = vector.broadcast %cst_108 : f32 to vector<1x256xf32>
    %644 = arith.select %642, %641, %643 : vector<1x256xi1>, vector<1x256xf32>
    %645 = arith.addf %633, %644 : vector<1x256xf32>
    %c86 = arith.constant 86 : index
    %646 = memref.load %arg13[%c86] : memref<98xf32, #tpu.memory_space<smem>>
    %647 = vector.broadcast %646 : f32 to vector<1x256xf32>
    %648 = arith.mulf %50, %647 : vector<1x256xf32>
    %c87 = arith.constant 87 : index
    %649 = memref.load %arg13[%c87] : memref<98xf32, #tpu.memory_space<smem>>
    %650 = vector.broadcast %649 : f32 to vector<1x256xf32>
    %651 = arith.mulf %54, %650 : vector<1x256xf32>
    %652 = arith.addf %648, %651 : vector<1x256xf32>
    %c210_i32 = arith.constant 210 : i32
    %653 = tpu.dynamic_rotate %652 by %c210_i32 dim 1 : vector<1x256xf32>, i32 -> vector<1x256xf32>
    %654 = arith.andi %91, %101 : vector<1x256xi1>
    %cst_109 = arith.constant 0.000000e+00 : f32
    %655 = vector.broadcast %cst_109 : f32 to vector<1x256xf32>
    %656 = arith.select %654, %653, %655 : vector<1x256xi1>, vector<1x256xf32>
    %657 = arith.addf %645, %656 : vector<1x256xf32>
    %c88 = arith.constant 88 : index
    %658 = memref.load %arg13[%c88] : memref<98xf32, #tpu.memory_space<smem>>
    %659 = vector.broadcast %658 : f32 to vector<1x256xf32>
    %660 = arith.mulf %50, %659 : vector<1x256xf32>
    %c89 = arith.constant 89 : index
    %661 = memref.load %arg13[%c89] : memref<98xf32, #tpu.memory_space<smem>>
    %662 = vector.broadcast %661 : f32 to vector<1x256xf32>
    %663 = arith.mulf %54, %662 : vector<1x256xf32>
    %664 = arith.addf %660, %663 : vector<1x256xf32>
    %c209_i32 = arith.constant 209 : i32
    %665 = tpu.dynamic_rotate %664 by %c209_i32 dim 1 : vector<1x256xf32>, i32 -> vector<1x256xf32>
    %666 = arith.andi %91, %106 : vector<1x256xi1>
    %cst_110 = arith.constant 0.000000e+00 : f32
    %667 = vector.broadcast %cst_110 : f32 to vector<1x256xf32>
    %668 = arith.select %666, %665, %667 : vector<1x256xi1>, vector<1x256xf32>
    %669 = arith.addf %657, %668 : vector<1x256xf32>
    %c90 = arith.constant 90 : index
    %670 = memref.load %arg13[%c90] : memref<98xf32, #tpu.memory_space<smem>>
    %671 = vector.broadcast %670 : f32 to vector<1x256xf32>
    %672 = arith.mulf %50, %671 : vector<1x256xf32>
    %c91 = arith.constant 91 : index
    %673 = memref.load %arg13[%c91] : memref<98xf32, #tpu.memory_space<smem>>
    %674 = vector.broadcast %673 : f32 to vector<1x256xf32>
    %675 = arith.mulf %54, %674 : vector<1x256xf32>
    %676 = arith.addf %672, %675 : vector<1x256xf32>
    %c208_i32 = arith.constant 208 : i32
    %677 = tpu.dynamic_rotate %676 by %c208_i32 dim 1 : vector<1x256xf32>, i32 -> vector<1x256xf32>
    %678 = arith.andi %91, %111 : vector<1x256xi1>
    %cst_111 = arith.constant 0.000000e+00 : f32
    %679 = vector.broadcast %cst_111 : f32 to vector<1x256xf32>
    %680 = arith.select %678, %677, %679 : vector<1x256xi1>, vector<1x256xf32>
    %681 = arith.addf %669, %680 : vector<1x256xf32>
    %c92 = arith.constant 92 : index
    %682 = memref.load %arg13[%c92] : memref<98xf32, #tpu.memory_space<smem>>
    %683 = vector.broadcast %682 : f32 to vector<1x256xf32>
    %684 = arith.mulf %50, %683 : vector<1x256xf32>
    %c93 = arith.constant 93 : index
    %685 = memref.load %arg13[%c93] : memref<98xf32, #tpu.memory_space<smem>>
    %686 = vector.broadcast %685 : f32 to vector<1x256xf32>
    %687 = arith.mulf %54, %686 : vector<1x256xf32>
    %688 = arith.addf %684, %687 : vector<1x256xf32>
    %c207_i32 = arith.constant 207 : i32
    %689 = tpu.dynamic_rotate %688 by %c207_i32 dim 1 : vector<1x256xf32>, i32 -> vector<1x256xf32>
    %690 = arith.andi %91, %116 : vector<1x256xi1>
    %cst_112 = arith.constant 0.000000e+00 : f32
    %691 = vector.broadcast %cst_112 : f32 to vector<1x256xf32>
    %692 = arith.select %690, %689, %691 : vector<1x256xi1>, vector<1x256xf32>
    %693 = arith.addf %681, %692 : vector<1x256xf32>
    %c94 = arith.constant 94 : index
    %694 = memref.load %arg13[%c94] : memref<98xf32, #tpu.memory_space<smem>>
    %695 = vector.broadcast %694 : f32 to vector<1x256xf32>
    %696 = arith.mulf %50, %695 : vector<1x256xf32>
    %c95 = arith.constant 95 : index
    %697 = memref.load %arg13[%c95] : memref<98xf32, #tpu.memory_space<smem>>
    %698 = vector.broadcast %697 : f32 to vector<1x256xf32>
    %699 = arith.mulf %54, %698 : vector<1x256xf32>
    %700 = arith.addf %696, %699 : vector<1x256xf32>
    %c206_i32 = arith.constant 206 : i32
    %701 = tpu.dynamic_rotate %700 by %c206_i32 dim 1 : vector<1x256xf32>, i32 -> vector<1x256xf32>
    %702 = arith.andi %91, %121 : vector<1x256xi1>
    %cst_113 = arith.constant 0.000000e+00 : f32
    %703 = vector.broadcast %cst_113 : f32 to vector<1x256xf32>
    %704 = arith.select %702, %701, %703 : vector<1x256xi1>, vector<1x256xf32>
    %705 = arith.addf %693, %704 : vector<1x256xf32>
    %c96 = arith.constant 96 : index
    %706 = memref.load %arg13[%c96] : memref<98xf32, #tpu.memory_space<smem>>
    %707 = vector.broadcast %706 : f32 to vector<1x256xf32>
    %708 = arith.mulf %50, %707 : vector<1x256xf32>
    %c97 = arith.constant 97 : index
    %709 = memref.load %arg13[%c97] : memref<98xf32, #tpu.memory_space<smem>>
    %710 = vector.broadcast %709 : f32 to vector<1x256xf32>
    %711 = arith.mulf %54, %710 : vector<1x256xf32>
    %712 = arith.addf %708, %711 : vector<1x256xf32>
    %c205_i32 = arith.constant 205 : i32
    %713 = tpu.dynamic_rotate %712 by %c205_i32 dim 1 : vector<1x256xf32>, i32 -> vector<1x256xf32>
    %714 = arith.andi %91, %126 : vector<1x256xi1>
    %cst_114 = arith.constant 0.000000e+00 : f32
    %715 = vector.broadcast %cst_114 : f32 to vector<1x256xf32>
    %716 = arith.select %714, %713, %715 : vector<1x256xi1>, vector<1x256xf32>
    %717 = arith.addf %705, %716 : vector<1x256xf32>
    %718 = arith.negf %717 : vector<1x256xf32>
    %719 = math.exp %718 : vector<1x256xf32>
    %cst_115 = arith.constant 1.000000e+00 : f32
    %720 = vector.broadcast %cst_115 : f32 to vector<1x256xf32>
    %721 = arith.addf %720, %719 : vector<1x256xf32>
    %722 = arith.divf %720, %721 : vector<1x256xf32>
    %c0_116 = arith.constant 0 : index
    %c0_117 = arith.constant 0 : index
    %c0_118 = arith.constant 0 : index
    %723 = vector.load %arg15[%c0_116, %c0_117, %c0_118] : memref<1x8x256xf32, #tpu.memory_space<vmem>>, vector<1x8x256xf32>
    %724 = vector.shape_cast %723 : vector<1x8x256xf32> to vector<8x256xf32>
    %725 = vector.shape_cast %16 : vector<8x256xf32> to vector<1x8x256xf32>
    tpu.vector_store %arg15[%c0_116, %c0_117, %c0_118], %725 {strides = array<i32>} : memref<1x8x256xf32, #tpu.memory_space<vmem>>, vector<1x8x256xf32>,
    %c0_119 = arith.constant 0 : index
    %c0_120 = arith.constant 0 : index
    %c0_121 = arith.constant 0 : index
    %726 = vector.load %arg16[%c0_119, %c0_120, %c0_121] : memref<1x8x256xf32, #tpu.memory_space<vmem>>, vector<1x8x256xf32>
    %727 = vector.shape_cast %726 : vector<1x8x256xf32> to vector<8x256xf32>
    %728 = vector.shape_cast %21 : vector<8x256xf32> to vector<1x8x256xf32>
    tpu.vector_store %arg16[%c0_119, %c0_120, %c0_121], %728 {strides = array<i32>} : memref<1x8x256xf32, #tpu.memory_space<vmem>>, vector<1x8x256xf32>,
    %729 = vector.broadcast %722 : vector<1x256xf32> to vector<8x256xf32>
    %730 = arith.mulf %48, %729 : vector<8x256xf32>
    %c0_122 = arith.constant 0 : index
    %c0_123 = arith.constant 0 : index
    %c0_124 = arith.constant 0 : index
    %731 = vector.load %arg17[%c0_122, %c0_123, %c0_124] : memref<1x8x256xf32, #tpu.memory_space<vmem>>, vector<1x8x256xf32>
    %732 = vector.shape_cast %731 : vector<1x8x256xf32> to vector<8x256xf32>
    %733 = vector.shape_cast %730 : vector<8x256xf32> to vector<1x8x256xf32>
    tpu.vector_store %arg17[%c0_122, %c0_123, %c0_124], %733 {strides = array<i32>} : memref<1x8x256xf32, #tpu.memory_space<vmem>>, vector<1x8x256xf32>,
    return
  }
  func.func @transform_0(%arg0: i32) -> (i32, i32, i32) {
    %c0_i32 = arith.constant 0 : i32
    %c0_i32_0 = arith.constant 0 : i32
    %c0_i32_1 = arith.constant 0 : i32
    return %arg0, %c0_i32, %c0_i32_0 : i32, i32, i32
  }
  func.func @transform_1(%arg0: i32) -> (i32, i32, i32) {
    %c0_i32 = arith.constant 0 : i32
    %c0_i32_0 = arith.constant 0 : i32
    %c0_i32_1 = arith.constant 0 : i32
    return %arg0, %c0_i32, %c0_i32_0 : i32, i32, i32
  }
  func.func @transform_2(%arg0: i32) -> (i32, i32, i32) {
    %c0_i32 = arith.constant 0 : i32
    %c0_i32_0 = arith.constant 0 : i32
    %c0_i32_1 = arith.constant 0 : i32
    return %arg0, %c0_i32, %c0_i32_0 : i32, i32, i32
  }
  func.func @transform_3(%arg0: i32) -> (i32, i32) {
    %c0_i32 = arith.constant 0 : i32
    %c0_i32_0 = arith.constant 0 : i32
    %c0_i32_1 = arith.constant 0 : i32
    return %c0_i32, %c0_i32_0 : i32, i32
  }
  func.func @transform_4(%arg0: i32) -> (i32, i32) {
    %c0_i32 = arith.constant 0 : i32
    %c0_i32_0 = arith.constant 0 : i32
    %c0_i32_1 = arith.constant 0 : i32
    return %c0_i32, %c0_i32_0 : i32, i32
  }
  func.func @transform_5(%arg0: i32) -> (i32, i32) {
    %c0_i32 = arith.constant 0 : i32
    %c0_i32_0 = arith.constant 0 : i32
    %c0_i32_1 = arith.constant 0 : i32
    return %c0_i32, %c0_i32_0 : i32, i32
  }
  func.func @transform_6(%arg0: i32) -> (i32, i32) {
    %c0_i32 = arith.constant 0 : i32
    %c0_i32_0 = arith.constant 0 : i32
    %c0_i32_1 = arith.constant 0 : i32
    return %c0_i32, %c0_i32_0 : i32, i32
  }
  func.func @transform_7(%arg0: i32) -> (i32, i32) {
    %c0_i32 = arith.constant 0 : i32
    %c0_i32_0 = arith.constant 0 : i32
    %c0_i32_1 = arith.constant 0 : i32
    return %c0_i32, %c0_i32_0 : i32, i32
  }
  func.func @transform_8(%arg0: i32) -> (i32, i32) {
    %c0_i32 = arith.constant 0 : i32
    %c0_i32_0 = arith.constant 0 : i32
    %c0_i32_1 = arith.constant 0 : i32
    return %c0_i32, %c0_i32_0 : i32, i32
  }
  func.func @transform_9(%arg0: i32) -> (i32, i32) {
    %c0_i32 = arith.constant 0 : i32
    %c0_i32_0 = arith.constant 0 : i32
    %c0_i32_1 = arith.constant 0 : i32
    return %c0_i32, %c0_i32_0 : i32, i32
  }
  func.func @transform_10(%arg0: i32) -> (i32, i32) {
    %c0_i32 = arith.constant 0 : i32
    %c0_i32_0 = arith.constant 0 : i32
    %c0_i32_1 = arith.constant 0 : i32
    return %c0_i32, %c0_i32_0 : i32, i32
  }
  func.func @transform_11(%arg0: i32) -> (i32, i32) {
    %c0_i32 = arith.constant 0 : i32
    %c0_i32_0 = arith.constant 0 : i32
    %c0_i32_1 = arith.constant 0 : i32
    return %c0_i32, %c0_i32_0 : i32, i32
  }
  func.func @transform_12(%arg0: i32) -> i32 {
    %c0_i32 = arith.constant 0 : i32
    %c0_i32_0 = arith.constant 0 : i32
    return %c0_i32 : i32
  }
  func.func @transform_13(%arg0: i32) -> i32 {
    %c0_i32 = arith.constant 0 : i32
    %c0_i32_0 = arith.constant 0 : i32
    return %c0_i32 : i32
  }
  func.func @transform_14(%arg0: i32) -> (i32, i32, i32) {
    %c0_i32 = arith.constant 0 : i32
    %c0_i32_0 = arith.constant 0 : i32
    %c0_i32_1 = arith.constant 0 : i32
    return %arg0, %c0_i32, %c0_i32_0 : i32, i32, i32
  }
  func.func @transform_15(%arg0: i32) -> (i32, i32, i32) {
    %c0_i32 = arith.constant 0 : i32
    %c0_i32_0 = arith.constant 0 : i32
    %c0_i32_1 = arith.constant 0 : i32
    return %arg0, %c0_i32, %c0_i32_0 : i32, i32, i32
  }
  func.func @transform_16(%arg0: i32) -> (i32, i32, i32) {
    %c0_i32 = arith.constant 0 : i32
    %c0_i32_0 = arith.constant 0 : i32
    %c0_i32_1 = arith.constant 0 : i32
    return %arg0, %c0_i32, %c0_i32_0 : i32, i32, i32
  }
}

</mosaic_0001>

<bundles_post_ra>
// kernel: tile.9
= control target key start
LH: loop header
LB: loop body
LE: loop exit
PB: predicated region body
PF: predicated region fallthrough
CT: control target
= control target key end

     0   :  { %s7_s6 = smov 3  ;;  %s21_s9 = smov 3  ;;  %vm4_vm0 = vcmask 130048   ;;  %vm11_vm1 = vcmask 1048448   ;;  %vm18_vm2 = vcmask 917248   ;;  %vm25_vm3 = vcmask 786048   ;;  %s128_s0 = inlined_call_operand.vmem [shape: s32[16,16], index: 0, kind: input, shape index: {}]   ;;  %s129_s1 = inlined_call_operand.vmem [shape: s32[1,256], index: 1, kind: output, shape index: {}]  }
   0x1   :  { %v66_v0 = vld [vmem:[%s128_s0 + $0x7] ss:$8 sm:%s7_s6]   ;;  %s81_s10 = smov 112   ;;  %v68_v1 = vld [vmem:[%s128_s0 + $0x5] ss:$8 sm:%s21_s9]   ;;  %s14_s13 = smov 3 }
   0x2   :  { %9 = vrot.lane.b32.xlu0 %v66_v0, %s81_s10  ;;  %s82_s14 = smov 80   ;;  %v67_v2 = vld [vmem:[%s128_s0 + $0x6] ss:$8 sm:%s14_s13]   ;;  %s28_s17 = smov 3  ;;  %vm32_vm4 = vcmask 654848   ;;  %vm39_vm5 = vcmask 523648  }
   0x3   :  { %23 = vrot.lane.b32.xlu1 %v68_v1, %s82_s14  ;;  %v69_v3 = vld [vmem:[%s128_s0 + $0x4] ss:$8 sm:%s28_s17]   ;;  %s35_s20 = smov 3  ;;  %s42_s21 = smov 3  ;;  %vm46_vm6 = vcmask 392448   ;;  %vm53_vm7 = vcmask 261248  }
   0x4   :  { %s83_s22 = smov 96   ;;  %s84_s23 = smov 64   ;;  %v70_v4 = vld [vmem:[%s128_s0 + $0x3] ss:$8 sm:%s35_s20]   ;;  %v71_v5 = vld [vmem:[%s128_s0 + $0x2] ss:$8 sm:%s42_s21]  }
   0x5   :  { %s2_s26 = smov 3  ;;  %s49_s29 = smov 3 }
   0x6   :  { %16 = vrot.lane.b32.xlu0 %v67_v2, %s83_s22  ;;  %v3_v6 = vld [vmem:[%s128_s0] ss:$8 sm:%s2_s26]   ;;  %s85_s3 = smov 48   ;;  %s86_s4 = smov 32  }
   0x7   :  { %30 = vrot.lane.b32.xlu1 %v69_v3, %s84_s23  ;;  %5 = vst.msk [vmem:[#allocation0] ss:$8 sm:$0x3] %vm4_vm0, %v3_v6   ;;  %v72_v7 = vld [vmem:[%s128_s0 + $0x1] ss:$8 sm:%s49_s29]   ;;  %s87_s0 = smov 16  }
   0xa   :  { %37 = vrot.lane.b32.xlu0 %v70_v4, %s85_s3 }
   0xb   :  { %44 = vrot.lane.b32.xlu1 %v71_v5, %s86_s4 }
   0xe   :  { %51 = vrot.lane.b32.xlu0 %v72_v7, %s87_s0 }
  0x74   :  { %v10_v8 = vpop.permute.xlu0 %9  }
  0x75   :  { %12 = vst.msk [vmem:[#allocation0] ss:$8 sm:$0x3] %vm11_vm1, %v10_v8   ;;  %v24_v9 = vpop.permute.xlu1 %23  }
  0x78   :  { %v17_v10 = vpop.permute.xlu0 %16  }
  0x79   :  { %19 = vst.msk [vmem:[#allocation0] ss:$8 sm:$0x3] %vm18_vm2, %v17_v10   ;;  %v31_v11 = vpop.permute.xlu1 %30  }
  0x7a   :  { %26 = vst.msk [vmem:[#allocation0] ss:$8 sm:$0x3] %vm25_vm3, %v24_v9  }
  0x7b   :  { %33 = vst.msk [vmem:[#allocation0] ss:$8 sm:$0x3] %vm32_vm4, %v31_v11  }
  0x7c   :  { %v38_v12 = vpop.permute.xlu0 %37  }
  0x7d   :  { %40 = vst.msk [vmem:[#allocation0] ss:$8 sm:$0x3] %vm39_vm5, %v38_v12   ;;  %v45_v13 = vpop.permute.xlu1 %44  }
  0x7e   :  { %47 = vst.msk [vmem:[#allocation0] ss:$8 sm:$0x3] %vm46_vm6, %v45_v13  }
  0x80   :  { %v52_v14 = vpop.permute.xlu0 %51  }
  0x81   :  { %54 = vst.msk [vmem:[#allocation0] ss:$8 sm:$0x3] %vm53_vm7, %v52_v14  }
  0x88   :  { %v58_v15 = vld [vmem:[#allocation0] sm:$0x1]  ;;  %v62_v16 = vld [vmem:[#allocation0 + $0x8] sm:$0x1] }
  0x89   :  { %60 = vst [vmem:[%s129_s1] sm:$0x1] %v58_v15  ;;  %73 = vst [vmem:[%s129_s1 + $0x1] sm:$0x1] %v62_v16 }

</bundles_post_ra>
